<compile_context>
chip_gen: v7x
topology: tpu7x:2x2x1
jax: 0.10.0
libtpu: 0.0.40
codegen_flags: <defaults>
</compile_context>

<pallas_src>
import math

import jax
import jax.numpy as jnp
from jax.experimental import pallas as pl
from jax.experimental.pallas import tpu as pltpu


# -----------------------------------------------------------------------------
# Small, TPU-friendly hyper-parameters (module defaults, scaled down).
# -----------------------------------------------------------------------------
SR = 2048                 # sample rate
IN_SECONDS = 1            # sample length in seconds
N_FFT = 256
HOP = 256                 # hop == n_fft -> framing is a pure reshape
N_MELS = 32
N_MFCC = 16
RNN_DIM = 32
Z_SIZE = 16
F_MIN = 20.0
F_MAX = 1000.0            # < sr/2 (makes the Nyquist-bin drop exact)
BATCH = 2

IN_SIZE = SR * IN_SECONDS
TIME_DIM = IN_SIZE // HOP          # = 8 (module crops mfcc to [:, :, :time_dim])
N_FREQ = N_FFT // 2 + 1            # onesided spectrum bins (129)
N_FREQ_USED = N_FFT // 2           # 128: Nyquist bin dropped (mel weight == 0)


# -----------------------------------------------------------------------------
# Constant-matrix construction (mirrors torchaudio's MFCC internals).
# Built ONCE, outside the jitted per-call path.
# -----------------------------------------------------------------------------
def hann_window(n):
    i = jnp.arange(n, dtype=jnp.float32)
    return 0.5 - 0.5 * jnp.cos(2.0 * jnp.pi * i / n)   # periodic hann


def melscale_fbanks(n_freqs, f_min, f_max, n_mels, sample_rate):
    # torchaudio default: HTK mel scale, norm=None
    def hz_to_mel(f):
        return 2595.0 * jnp.log10(1.0 + f / 700.0)

    def mel_to_hz(m):
        return 700.0 * (10.0 ** (m / 2595.0) - 1.0)

    all_freqs = jnp.linspace(0.0, sample_rate // 2, n_freqs)
    m_pts = jnp.linspace(hz_to_mel(jnp.float32(f_min)),
                         hz_to_mel(jnp.float32(f_max)), n_mels + 2)
    f_pts = mel_to_hz(m_pts)
    f_diff = f_pts[1:] - f_pts[:-1]                       # (n_mels+1,)
    slopes = f_pts[None, :] - all_freqs[:, None]          # (n_freqs, n_mels+2)
    down = -slopes[:, :-2] / f_diff[:-1]
    up = slopes[:, 2:] / f_diff[1:]
    fb = jnp.maximum(0.0, jnp.minimum(down, up))          # (n_freqs, n_mels)
    return fb.astype(jnp.float32)


def create_dct(n_mfcc, n_mels):
    # torchaudio create_dct(..., norm="ortho")
    n = jnp.arange(n_mels, dtype=jnp.float32)
    k = jnp.arange(n_mfcc, dtype=jnp.float32)[:, None]
    dct = jnp.cos(jnp.pi / n_mels * (n + 0.5) * k)        # (n_mfcc, n_mels)
    dct = dct.at[0].multiply(1.0 / math.sqrt(2.0))
    dct = dct * math.sqrt(2.0 / n_mels)
    return dct.T.astype(jnp.float32)                      # (n_mels, n_mfcc)


def build_constants(batch=BATCH):
    # The Nyquist bin is only droppable while its mel weight is exactly zero.
    assert F_MAX < SR / 2, "Nyquist-bin drop requires f_max < sr/2"

    # Windowed real-DFT as ONE matmul matrix [cos | sin] of shape (n_fft, 256);
    # bin k=128 dropped (mel weight 0).  Sign of sin is irrelevant for power.
    n = jnp.arange(N_FFT, dtype=jnp.float32)[:, None]
    k = jnp.arange(N_FREQ_USED, dtype=jnp.float32)[None, :]
    ang = 2.0 * jnp.pi * n * k / N_FFT
    w = hann_window(N_FFT)[:, None]
    dftm = jnp.concatenate([jnp.cos(ang) * w, jnp.sin(ang) * w], axis=1)  # (256, 256)

    # Mel filterbank doubled along rows so |X|^2 = re^2 + im^2 folds into the
    # contraction: (spec*spec) @ [fb; fb] == (re^2 + im^2) @ fb.
    fb_full = melscale_fbanks(N_FREQ, F_MIN, F_MAX, N_MELS, SR)           # (129, n_mels)
    fb = fb_full[:N_FREQ_USED, :]                                         # (128, n_mels)
    fb2 = jnp.concatenate([fb, fb], axis=0)                               # (256, n_mels)

    dct = create_dct(N_MFCC, N_MELS)                                      # (n_mels, n_mfcc)

    # Row permutation (b,t)-major -> (t,b)-major, applied as one tiny matmul
    # inside the kernel (keeps the GRU per-step slice contiguous, no
    # transposes / strided slices in Mosaic).
    rows = jnp.arange(batch * TIME_DIM)
    src = (rows % batch) * TIME_DIM + rows // batch
    perm = jax.nn.one_hot(src, batch * TIME_DIM, dtype=jnp.float32)       # (T*B, B*T)

    return {"dftm": dftm.astype(jnp.float32), "fb2": fb2, "dct": dct, "perm": perm}


# -----------------------------------------------------------------------------
# Fused Pallas kernel: MFCC -> LayerNorm -> GRU -> Linear
# -----------------------------------------------------------------------------
def zencoder_kernel(frames_ref,                 # (B*T, n_fft)   rows ordered b*T + t
                    dftm_ref,                   # (n_fft, 256)   [cos|sin], Nyquist dropped
                    fb2_ref,                    # (256, n_mels)  [fb; fb]
                    dct_ref,                    # (n_mels, n_mfcc)
                    perm_ref,                   # (T*B, B*T)     (b,t)->(t,b) row permutation
                    lnw_ref, lnb_ref,           # (T, n_mfcc)    LayerNorm gamma/beta (transposed)
                    wi_ref, wh_ref,             # (n_mfcc, 3H), (H, 3H)  gates packed [r|z|n]
                    bi_ref, bh_ref,             # (1, 3H), (1, 3H)
                    wl_ref, bl_ref,             # (H, z), (1, z)
                    out_ref,                    # (T*B, z)       rows ordered t*B + b
                    hbuf_ref):                  # VMEM scratch (T*B, H)
    H = RNN_DIM
    B = frames_ref.shape[0] // TIME_DIM

    # ---- MFCC: windowed real DFT -> power folded into mel matmul -> log -> DCT ----
    spec = jnp.dot(frames_ref[...], dftm_ref[...],
                   preferred_element_type=jnp.float32)                     # (B*T, 256)
    mel = jnp.dot(spec * spec, fb2_ref[...],
                  preferred_element_type=jnp.float32)                      # (B*T, n_mels)
    mfcc = jnp.dot(jnp.log(mel + 1e-6), dct_ref[...],
                   preferred_element_type=jnp.float32)                     # (B*T, n_mfcc)

    # ---- LayerNorm over (n_mfcc, time) per batch: each batch is a contiguous,
    #      tile-aligned (T, C) block of rows; scalar mean/var + (T, C) affine. ----
    lnw = lnw_ref[...]
    lnb = lnb_ref[...]
    blocks = []
    for b in range(B):
        blk = mfcc[b * TIME_DIM:(b + 1) * TIME_DIM, :]                     # (T, C)
        mu = jnp.mean(blk, keepdims=True)
        var = jnp.mean((blk - mu) ** 2, keepdims=True)
        blocks.append((blk - mu) * jax.lax.rsqrt(var + 1e-5) * lnw + lnb)
    zn = jnp.concatenate(blocks, axis=0)                                   # (B*T, C), rows b*T+t

    # ---- Reorder rows to time-major (t*B + b) with one tiny permutation matmul ----
    zt = jnp.dot(perm_ref[...], zn, preferred_element_type=jnp.float32)    # (T*B, C)

    # ---- GRU: input projection hoisted out of the loop (one matmul) ----
    gi_all = jnp.dot(zt, wi_ref[...],
                     preferred_element_type=jnp.float32) + bi_ref[...]     # (T*B, 3H)

    wh = wh_ref[...]
    bh = bh_ref[...]
    h = jnp.zeros((B, H), jnp.float32)
    for t in range(TIME_DIM):                                              # statically unrolled
        gi = gi_all[t * B:(t + 1) * B, :]                                  # (B, 3H)
        gh = jnp.dot(h, wh, preferred_element_type=jnp.float32) + bh       # (B, 3H)
        r = jax.nn.sigmoid(gi[:, :H] + gh[:, :H])
        zg = jax.nn.sigmoid(gi[:, H:2 * H] + gh[:, H:2 * H])
        n = jnp.tanh(gi[:, 2 * H:] + r * gh[:, 2 * H:])                    # b_hn inside gh, gated by r
        h = (1.0 - zg) * n + zg * h
        hbuf_ref[pl.ds(t * B, B), :] = h                                   # stage h_t in VMEM scratch

    # ---- Final Linear on all T*B hidden states at once + ONE dense store ----
    out_ref[...] = (jnp.dot(hbuf_ref[...], wl_ref[...],
                            preferred_element_type=jnp.float32) + bl_ref[...])


# -----------------------------------------------------------------------------
# Wrapper (jitted): framing is a pure reshape since hop == n_fft.
# -----------------------------------------------------------------------------
@jax.jit
def zencoder_forward(x, params, consts):
    """x: (B, N) float32 -> (T, B, z_size) float32."""
    B = x.shape[0]
    pad = N_FFT // 2
    xp = jnp.pad(x, ((0, 0), (pad, pad)), mode="reflect")        # center=True reflect pad (glue)
    # hop == n_fft -> frames 0..T-1 are contiguous; first T frames == crop to time_dim.
    frames = xp[:, :TIME_DIM * N_FFT].reshape(B * TIME_DIM, N_FFT)

    n_inputs = 13
    out = pl.pallas_call(
        zencoder_kernel,
        out_shape=jax.ShapeDtypeStruct((TIME_DIM * B, Z_SIZE), jnp.float32),
        in_specs=[pl.BlockSpec(memory_space=pltpu.MemorySpace.VMEM)
                  for _ in range(n_inputs)],
        out_specs=pl.BlockSpec(memory_space=pltpu.MemorySpace.VMEM),
        scratch_shapes=[pltpu.VMEM((TIME_DIM * B, RNN_DIM), jnp.float32)],
    )(frames, consts["dftm"], consts["fb2"], consts["dct"], consts["perm"],
      params["ln_w_t"], params["ln_b_t"],
      params["w_i"], params["w_h"], params["b_i"], params["b_h"],
      params["w_lin"], params["b_lin"])
    return out.reshape(TIME_DIM, B, Z_SIZE)     # rows are (t, b) -> seq-first output


def init_params(key):
    H, F = RNN_DIM, N_MFCC
    ks = jax.random.split(key, 6)
    s = 1.0 / math.sqrt(H)
    u = lambda k, shape: jax.random.uniform(k, shape, jnp.float32, -s, s)
    return {
        # GRU weights packed [r|z|n] along the output (lane) dim, stored transposed
        # for the x @ W layout (PyTorch stores W_ih as (3H, F)).
        "w_i": u(ks[0], (F, 3 * H)),
        "w_h": u(ks[1], (H, 3 * H)),
        "b_i": u(ks[2], (1, 3 * H)),
        "b_h": u(ks[3], (1, 3 * H)),
        # Linear(rnn_dim, z_size), stored transposed.
        "w_lin": u(ks[4], (H, Z_SIZE)),
        "b_lin": u(ks[5], (1, Z_SIZE)),
        # LayerNorm((n_mfcc, time_dim)) params stored pre-transposed as (T, C)
        # (ln_w_t[t, c] == PyTorch gamma[c, t]); default init weight=1, bias=0.
        "ln_w_t": jnp.ones((TIME_DIM, N_MFCC), jnp.float32),
        "ln_b_t": jnp.zeros((TIME_DIM, N_MFCC), jnp.float32),
    }


if __name__ == "__main__":
    key = jax.random.PRNGKey(0)
    k_x, k_p = jax.random.split(key)
    x = jax.random.normal(k_x, (BATCH, IN_SIZE), jnp.float32)
    params = init_params(k_p)
    consts = build_constants()          # built once, outside the per-call path

    out = jax.block_until_ready(zencoder_forward(x, params, consts))
    assert out.shape == (TIME_DIM, BATCH, Z_SIZE), out.shape
    assert out.dtype == jnp.float32
    print("KERNEL_OK")
</pallas_src>

<mosaic_0001>
module attributes {stable_mosaic.version = 11 : i64} {
  func.func @zencoder_kernel(%arg0: memref<16x256xf32, #tpu.memory_space<vmem>>, %arg1: memref<256x256xf32, #tpu.memory_space<vmem>>, %arg2: memref<256x32xf32, #tpu.memory_space<vmem>>, %arg3: memref<32x16xf32, #tpu.memory_space<vmem>>, %arg4: memref<16x16xf32, #tpu.memory_space<vmem>>, %arg5: memref<8x16xf32, #tpu.memory_space<vmem>>, %arg6: memref<8x16xf32, #tpu.memory_space<vmem>>, %arg7: memref<16x96xf32, #tpu.memory_space<vmem>>, %arg8: memref<32x96xf32, #tpu.memory_space<vmem>>, %arg9: memref<1x96xf32, #tpu.memory_space<vmem>>, %arg10: memref<1x96xf32, #tpu.memory_space<vmem>>, %arg11: memref<32x16xf32, #tpu.memory_space<vmem>>, %arg12: memref<1x16xf32, #tpu.memory_space<vmem>>, %arg13: memref<16x16xf32, #tpu.memory_space<vmem>>, %arg14: memref<16x32xf32, #tpu.memory_space<vmem>>) attributes {dimension_semantics = [], scalar_prefetch = 0 : i64, scratch_operands = 1 : i64, tpu.core_type = #tpu.core_type<tc>} {
    %c0 = arith.constant 0 : index
    %c0_0 = arith.constant 0 : index
    %0 = vector.load %arg0[%c0, %c0_0] : memref<16x256xf32, #tpu.memory_space<vmem>>, vector<16x256xf32>
    %c0_1 = arith.constant 0 : index
    %c0_2 = arith.constant 0 : index
    %1 = vector.load %arg1[%c0_1, %c0_2] : memref<256x256xf32, #tpu.memory_space<vmem>>, vector<256x256xf32>
    %cst = arith.constant dense<0.000000e+00> : vector<16x256xf32>
    %2 = tpu.matmul %0, %1, %cst {dimension_numbers = #tpu.dot_dimension_numbers<[1], [0], [0], [1], [0, 0, 1, 1], [], []>} : vector<16x256xf32>, vector<256x256xf32>, vector<16x256xf32> -> vector<16x256xf32>
    %3 = arith.mulf %2, %2 : vector<16x256xf32>
    %c0_3 = arith.constant 0 : index
    %c0_4 = arith.constant 0 : index
    %4 = vector.load %arg2[%c0_3, %c0_4] : memref<256x32xf32, #tpu.memory_space<vmem>>, vector<256x32xf32>
    %cst_5 = arith.constant dense<0.000000e+00> : vector<16x32xf32>
    %5 = tpu.matmul %3, %4, %cst_5 {dimension_numbers = #tpu.dot_dimension_numbers<[1], [0], [0], [1], [0, 0, 1, 1], [], []>} : vector<16x256xf32>, vector<256x32xf32>, vector<16x32xf32> -> vector<16x32xf32>
    %cst_6 = arith.constant 9.99999997E-7 : f32
    %6 = vector.broadcast %cst_6 : f32 to vector<16x32xf32>
    %7 = arith.addf %5, %6 : vector<16x32xf32>
    %8 = math.log %7 : vector<16x32xf32>
    %c0_7 = arith.constant 0 : index
    %c0_8 = arith.constant 0 : index
    %9 = vector.load %arg3[%c0_7, %c0_8] : memref<32x16xf32, #tpu.memory_space<vmem>>, vector<32x16xf32>
    %cst_9 = arith.constant dense<0.000000e+00> : vector<16x16xf32>
    %10 = tpu.matmul %8, %9, %cst_9 {dimension_numbers = #tpu.dot_dimension_numbers<[1], [0], [0], [1], [0, 0, 1, 1], [], []>} : vector<16x32xf32>, vector<32x16xf32>, vector<16x16xf32> -> vector<16x16xf32>
    %c0_10 = arith.constant 0 : index
    %c0_11 = arith.constant 0 : index
    %11 = vector.load %arg5[%c0_10, %c0_11] : memref<8x16xf32, #tpu.memory_space<vmem>>, vector<8x16xf32>
    %c0_12 = arith.constant 0 : index
    %c0_13 = arith.constant 0 : index
    %12 = vector.load %arg6[%c0_12, %c0_13] : memref<8x16xf32, #tpu.memory_space<vmem>>, vector<8x16xf32>
    %13 = vector.extract_strided_slice %10 {offsets = [0, 0], sizes = [8, 16], strides = [1, 1]} : vector<16x16xf32> to vector<8x16xf32>
    %14 = vector.shape_cast %13 : vector<8x16xf32> to vector<1x8x16xf32>
    %cst_14 = arith.constant dense<0.000000e+00> : vector<1xf32>
    %15 = vector.multi_reduction <add>, %14, %cst_14 [1, 2] : vector<1x8x16xf32> to vector<1xf32>
    %16 = vector.shape_cast %15 : vector<1xf32> to vector<1x1x1xf32>
    %17 = vector.extract %16[0, 0, 0] : f32 from vector<1x1x1xf32>
    %18 = vector.broadcast %17 : f32 to vector<1x1xf32>
    %cst_15 = arith.constant 1.280000e+02 : f32
    %19 = vector.broadcast %cst_15 : f32 to vector<1x1xf32>
    %20 = arith.divf %18, %19 : vector<1x1xf32>
    %21 = vector.broadcast %20 : vector<1x1xf32> to vector<8x16xf32>
    %22 = arith.subf %13, %21 : vector<8x16xf32>
    %23 = arith.mulf %22, %22 : vector<8x16xf32>
    %24 = vector.shape_cast %23 : vector<8x16xf32> to vector<1x8x16xf32>
    %cst_16 = arith.constant dense<0.000000e+00> : vector<1xf32>
    %25 = vector.multi_reduction <add>, %24, %cst_16 [1, 2] : vector<1x8x16xf32> to vector<1xf32>
    %26 = vector.shape_cast %25 : vector<1xf32> to vector<1x1x1xf32>
    %27 = vector.extract %26[0, 0, 0] : f32 from vector<1x1x1xf32>
    %28 = vector.broadcast %27 : f32 to vector<1x1xf32>
    %cst_17 = arith.constant 1.280000e+02 : f32
    %29 = vector.broadcast %cst_17 : f32 to vector<1x1xf32>
    %30 = arith.divf %28, %29 : vector<1x1xf32>
    %31 = vector.broadcast %20 : vector<1x1xf32> to vector<8x16xf32>
    %32 = arith.subf %13, %31 : vector<8x16xf32>
    %cst_18 = arith.constant 9.99999974E-6 : f32
    %33 = vector.broadcast %cst_18 : f32 to vector<1x1xf32>
    %34 = arith.addf %30, %33 : vector<1x1xf32>
    %35 = math.rsqrt %34 : vector<1x1xf32>
    %36 = vector.broadcast %35 : vector<1x1xf32> to vector<8x16xf32>
    %37 = arith.mulf %32, %36 : vector<8x16xf32>
    %38 = arith.mulf %37, %11 : vector<8x16xf32>
    %39 = arith.addf %38, %12 : vector<8x16xf32>
    %40 = vector.extract_strided_slice %10 {offsets = [8, 0], sizes = [8, 16], strides = [1, 1]} : vector<16x16xf32> to vector<8x16xf32>
    %41 = vector.shape_cast %40 : vector<8x16xf32> to vector<1x8x16xf32>
    %cst_19 = arith.constant dense<0.000000e+00> : vector<1xf32>
    %42 = vector.multi_reduction <add>, %41, %cst_19 [1, 2] : vector<1x8x16xf32> to vector<1xf32>
    %43 = vector.shape_cast %42 : vector<1xf32> to vector<1x1x1xf32>
    %44 = vector.extract %43[0, 0, 0] : f32 from vector<1x1x1xf32>
    %45 = vector.broadcast %44 : f32 to vector<1x1xf32>
    %cst_20 = arith.constant 1.280000e+02 : f32
    %46 = vector.broadcast %cst_20 : f32 to vector<1x1xf32>
    %47 = arith.divf %45, %46 : vector<1x1xf32>
    %48 = vector.broadcast %47 : vector<1x1xf32> to vector<8x16xf32>
    %49 = arith.subf %40, %48 : vector<8x16xf32>
    %50 = arith.mulf %49, %49 : vector<8x16xf32>
    %51 = vector.shape_cast %50 : vector<8x16xf32> to vector<1x8x16xf32>
    %cst_21 = arith.constant dense<0.000000e+00> : vector<1xf32>
    %52 = vector.multi_reduction <add>, %51, %cst_21 [1, 2] : vector<1x8x16xf32> to vector<1xf32>
    %53 = vector.shape_cast %52 : vector<1xf32> to vector<1x1x1xf32>
    %54 = vector.extract %53[0, 0, 0] : f32 from vector<1x1x1xf32>
    %55 = vector.broadcast %54 : f32 to vector<1x1xf32>
    %cst_22 = arith.constant 1.280000e+02 : f32
    %56 = vector.broadcast %cst_22 : f32 to vector<1x1xf32>
    %57 = arith.divf %55, %56 : vector<1x1xf32>
    %58 = vector.broadcast %47 : vector<1x1xf32> to vector<8x16xf32>
    %59 = arith.subf %40, %58 : vector<8x16xf32>
    %cst_23 = arith.constant 9.99999974E-6 : f32
    %60 = vector.broadcast %cst_23 : f32 to vector<1x1xf32>
    %61 = arith.addf %57, %60 : vector<1x1xf32>
    %62 = math.rsqrt %61 : vector<1x1xf32>
    %63 = vector.broadcast %62 : vector<1x1xf32> to vector<8x16xf32>
    %64 = arith.mulf %59, %63 : vector<8x16xf32>
    %65 = arith.mulf %64, %11 : vector<8x16xf32>
    %66 = arith.addf %65, %12 : vector<8x16xf32>
    %67 = tpu.concatenate %39, %66 in 0 : vector<8x16xf32>, vector<8x16xf32> -> vector<16x16xf32>
    %c0_24 = arith.constant 0 : index
    %c0_25 = arith.constant 0 : index
    %68 = vector.load %arg4[%c0_24, %c0_25] : memref<16x16xf32, #tpu.memory_space<vmem>>, vector<16x16xf32>
    %cst_26 = arith.constant dense<0.000000e+00> : vector<16x16xf32>
    %69 = tpu.matmul %68, %67, %cst_26 {dimension_numbers = #tpu.dot_dimension_numbers<[1], [0], [0], [1], [0, 0, 1, 1], [], []>} : vector<16x16xf32>, vector<16x16xf32>, vector<16x16xf32> -> vector<16x16xf32>
    %c0_27 = arith.constant 0 : index
    %c0_28 = arith.constant 0 : index
    %70 = vector.load %arg7[%c0_27, %c0_28] : memref<16x96xf32, #tpu.memory_space<vmem>>, vector<16x96xf32>
    %cst_29 = arith.constant dense<0.000000e+00> : vector<16x96xf32>
    %71 = tpu.matmul %69, %70, %cst_29 {dimension_numbers = #tpu.dot_dimension_numbers<[1], [0], [0], [1], [0, 0, 1, 1], [], []>} : vector<16x16xf32>, vector<16x96xf32>, vector<16x96xf32> -> vector<16x96xf32>
    %c0_30 = arith.constant 0 : index
    %c0_31 = arith.constant 0 : index
    %72 = vector.load %arg9[%c0_30, %c0_31] : memref<1x96xf32, #tpu.memory_space<vmem>>, vector<1x96xf32>
    %73 = vector.broadcast %72 : vector<1x96xf32> to vector<16x96xf32>
    %74 = arith.addf %71, %73 : vector<16x96xf32>
    %c0_32 = arith.constant 0 : index
    %c0_33 = arith.constant 0 : index
    %75 = vector.load %arg8[%c0_32, %c0_33] : memref<32x96xf32, #tpu.memory_space<vmem>>, vector<32x96xf32>
    %c0_34 = arith.constant 0 : index
    %c0_35 = arith.constant 0 : index
    %76 = vector.load %arg10[%c0_34, %c0_35] : memref<1x96xf32, #tpu.memory_space<vmem>>, vector<1x96xf32>
    %cst_36 = arith.constant 0.000000e+00 : f32
    %77 = vector.broadcast %cst_36 : f32 to vector<2x32xf32>
    %78 = vector.extract_strided_slice %74 {offsets = [0, 0], sizes = [2, 96], strides = [1, 1]} : vector<16x96xf32> to vector<2x96xf32>
    %cst_37 = arith.constant dense<0.000000e+00> : vector<2x96xf32>
    %79 = tpu.matmul %77, %75, %cst_37 {dimension_numbers = #tpu.dot_dimension_numbers<[1], [0], [0], [1], [0, 0, 1, 1], [], []>} : vector<2x32xf32>, vector<32x96xf32>, vector<2x96xf32> -> vector<2x96xf32>
    %80 = vector.broadcast %76 : vector<1x96xf32> to vector<2x96xf32>
    %81 = arith.addf %79, %80 : vector<2x96xf32>
    %82 = vector.extract_strided_slice %78 {offsets = [0, 0], sizes = [2, 32], strides = [1, 1]} : vector<2x96xf32> to vector<2x32xf32>
    %83 = vector.extract_strided_slice %81 {offsets = [0, 0], sizes = [2, 32], strides = [1, 1]} : vector<2x96xf32> to vector<2x32xf32>
    %84 = arith.addf %82, %83 : vector<2x32xf32>
    %85 = arith.negf %84 : vector<2x32xf32>
    %86 = math.exp %85 : vector<2x32xf32>
    %cst_38 = arith.constant 1.000000e+00 : f32
    %87 = vector.broadcast %cst_38 : f32 to vector<2x32xf32>
    %88 = arith.addf %87, %86 : vector<2x32xf32>
    %89 = arith.divf %87, %88 : vector<2x32xf32>
    %90 = vector.extract_strided_slice %78 {offsets = [0, 32], sizes = [2, 32], strides = [1, 1]} : vector<2x96xf32> to vector<2x32xf32>
    %91 = vector.extract_strided_slice %81 {offsets = [0, 32], sizes = [2, 32], strides = [1, 1]} : vector<2x96xf32> to vector<2x32xf32>
    %92 = arith.addf %90, %91 : vector<2x32xf32>
    %93 = arith.negf %92 : vector<2x32xf32>
    %94 = math.exp %93 : vector<2x32xf32>
    %cst_39 = arith.constant 1.000000e+00 : f32
    %95 = vector.broadcast %cst_39 : f32 to vector<2x32xf32>
    %96 = arith.addf %95, %94 : vector<2x32xf32>
    %97 = arith.divf %95, %96 : vector<2x32xf32>
    %98 = vector.extract_strided_slice %78 {offsets = [0, 64], sizes = [2, 32], strides = [1, 1]} : vector<2x96xf32> to vector<2x32xf32>
    %99 = vector.extract_strided_slice %81 {offsets = [0, 64], sizes = [2, 32], strides = [1, 1]} : vector<2x96xf32> to vector<2x32xf32>
    %100 = arith.mulf %89, %99 : vector<2x32xf32>
    %101 = arith.addf %98, %100 : vector<2x32xf32>
    %102 = math.tanh %101 : vector<2x32xf32>
    %cst_40 = arith.constant 1.000000e+00 : f32
    %103 = vector.broadcast %cst_40 : f32 to vector<2x32xf32>
    %104 = arith.subf %103, %97 : vector<2x32xf32>
    %105 = arith.mulf %104, %102 : vector<2x32xf32>
    %106 = arith.mulf %97, %77 : vector<2x32xf32>
    %107 = arith.addf %105, %106 : vector<2x32xf32>
    %c0_41 = arith.constant 0 : index
    %c0_42 = arith.constant 0 : index
    %108 = vector.load %arg14[%c0_41, %c0_42] : memref<16x32xf32, #tpu.memory_space<vmem>>, vector<2x32xf32>
    tpu.vector_store %arg14[%c0_41, %c0_42], %107 {strides = array<i32>} : memref<16x32xf32, #tpu.memory_space<vmem>>, vector<2x32xf32>,
    %109 = vector.extract_strided_slice %74 {offsets = [2, 0], sizes = [2, 96], strides = [1, 1]} : vector<16x96xf32> to vector<2x96xf32>
    %cst_43 = arith.constant dense<0.000000e+00> : vector<2x96xf32>
    %110 = tpu.matmul %107, %75, %cst_43 {dimension_numbers = #tpu.dot_dimension_numbers<[1], [0], [0], [1], [0, 0, 1, 1], [], []>} : vector<2x32xf32>, vector<32x96xf32>, vector<2x96xf32> -> vector<2x96xf32>
    %111 = vector.broadcast %76 : vector<1x96xf32> to vector<2x96xf32>
    %112 = arith.addf %110, %111 : vector<2x96xf32>
    %113 = vector.extract_strided_slice %109 {offsets = [0, 0], sizes = [2, 32], strides = [1, 1]} : vector<2x96xf32> to vector<2x32xf32>
    %114 = vector.extract_strided_slice %112 {offsets = [0, 0], sizes = [2, 32], strides = [1, 1]} : vector<2x96xf32> to vector<2x32xf32>
    %115 = arith.addf %113, %114 : vector<2x32xf32>
    %116 = arith.negf %115 : vector<2x32xf32>
    %117 = math.exp %116 : vector<2x32xf32>
    %cst_44 = arith.constant 1.000000e+00 : f32
    %118 = vector.broadcast %cst_44 : f32 to vector<2x32xf32>
    %119 = arith.addf %118, %117 : vector<2x32xf32>
    %120 = arith.divf %118, %119 : vector<2x32xf32>
    %121 = vector.extract_strided_slice %109 {offsets = [0, 32], sizes = [2, 32], strides = [1, 1]} : vector<2x96xf32> to vector<2x32xf32>
    %122 = vector.extract_strided_slice %112 {offsets = [0, 32], sizes = [2, 32], strides = [1, 1]} : vector<2x96xf32> to vector<2x32xf32>
    %123 = arith.addf %121, %122 : vector<2x32xf32>
    %124 = arith.negf %123 : vector<2x32xf32>
    %125 = math.exp %124 : vector<2x32xf32>
    %cst_45 = arith.constant 1.000000e+00 : f32
    %126 = vector.broadcast %cst_45 : f32 to vector<2x32xf32>
    %127 = arith.addf %126, %125 : vector<2x32xf32>
    %128 = arith.divf %126, %127 : vector<2x32xf32>
    %129 = vector.extract_strided_slice %109 {offsets = [0, 64], sizes = [2, 32], strides = [1, 1]} : vector<2x96xf32> to vector<2x32xf32>
    %130 = vector.extract_strided_slice %112 {offsets = [0, 64], sizes = [2, 32], strides = [1, 1]} : vector<2x96xf32> to vector<2x32xf32>
    %131 = arith.mulf %120, %130 : vector<2x32xf32>
    %132 = arith.addf %129, %131 : vector<2x32xf32>
    %133 = math.tanh %132 : vector<2x32xf32>
    %cst_46 = arith.constant 1.000000e+00 : f32
    %134 = vector.broadcast %cst_46 : f32 to vector<2x32xf32>
    %135 = arith.subf %134, %128 : vector<2x32xf32>
    %136 = arith.mulf %135, %133 : vector<2x32xf32>
    %137 = arith.mulf %128, %107 : vector<2x32xf32>
    %138 = arith.addf %136, %137 : vector<2x32xf32>
    %c2 = arith.constant 2 : index
    %c0_47 = arith.constant 0 : index
    %139 = vector.load %arg14[%c2, %c0_47] : memref<16x32xf32, #tpu.memory_space<vmem>>, vector<2x32xf32>
    tpu.vector_store %arg14[%c2, %c0_47], %138 {strides = array<i32>} : memref<16x32xf32, #tpu.memory_space<vmem>>, vector<2x32xf32>,
    %140 = vector.extract_strided_slice %74 {offsets = [4, 0], sizes = [2, 96], strides = [1, 1]} : vector<16x96xf32> to vector<2x96xf32>
    %cst_48 = arith.constant dense<0.000000e+00> : vector<2x96xf32>
    %141 = tpu.matmul %138, %75, %cst_48 {dimension_numbers = #tpu.dot_dimension_numbers<[1], [0], [0], [1], [0, 0, 1, 1], [], []>} : vector<2x32xf32>, vector<32x96xf32>, vector<2x96xf32> -> vector<2x96xf32>
    %142 = vector.broadcast %76 : vector<1x96xf32> to vector<2x96xf32>
    %143 = arith.addf %141, %142 : vector<2x96xf32>
    %144 = vector.extract_strided_slice %140 {offsets = [0, 0], sizes = [2, 32], strides = [1, 1]} : vector<2x96xf32> to vector<2x32xf32>
    %145 = vector.extract_strided_slice %143 {offsets = [0, 0], sizes = [2, 32], strides = [1, 1]} : vector<2x96xf32> to vector<2x32xf32>
    %146 = arith.addf %144, %145 : vector<2x32xf32>
    %147 = arith.negf %146 : vector<2x32xf32>
    %148 = math.exp %147 : vector<2x32xf32>
    %cst_49 = arith.constant 1.000000e+00 : f32
    %149 = vector.broadcast %cst_49 : f32 to vector<2x32xf32>
    %150 = arith.addf %149, %148 : vector<2x32xf32>
    %151 = arith.divf %149, %150 : vector<2x32xf32>
    %152 = vector.extract_strided_slice %140 {offsets = [0, 32], sizes = [2, 32], strides = [1, 1]} : vector<2x96xf32> to vector<2x32xf32>
    %153 = vector.extract_strided_slice %143 {offsets = [0, 32], sizes = [2, 32], strides = [1, 1]} : vector<2x96xf32> to vector<2x32xf32>
    %154 = arith.addf %152, %153 : vector<2x32xf32>
    %155 = arith.negf %154 : vector<2x32xf32>
    %156 = math.exp %155 : vector<2x32xf32>
    %cst_50 = arith.constant 1.000000e+00 : f32
    %157 = vector.broadcast %cst_50 : f32 to vector<2x32xf32>
    %158 = arith.addf %157, %156 : vector<2x32xf32>
    %159 = arith.divf %157, %158 : vector<2x32xf32>
    %160 = vector.extract_strided_slice %140 {offsets = [0, 64], sizes = [2, 32], strides = [1, 1]} : vector<2x96xf32> to vector<2x32xf32>
    %161 = vector.extract_strided_slice %143 {offsets = [0, 64], sizes = [2, 32], strides = [1, 1]} : vector<2x96xf32> to vector<2x32xf32>
    %162 = arith.mulf %151, %161 : vector<2x32xf32>
    %163 = arith.addf %160, %162 : vector<2x32xf32>
    %164 = math.tanh %163 : vector<2x32xf32>
    %cst_51 = arith.constant 1.000000e+00 : f32
    %165 = vector.broadcast %cst_51 : f32 to vector<2x32xf32>
    %166 = arith.subf %165, %159 : vector<2x32xf32>
    %167 = arith.mulf %166, %164 : vector<2x32xf32>
    %168 = arith.mulf %159, %138 : vector<2x32xf32>
    %169 = arith.addf %167, %168 : vector<2x32xf32>
    %c4 = arith.constant 4 : index
    %c0_52 = arith.constant 0 : index
    %170 = vector.load %arg14[%c4, %c0_52] : memref<16x32xf32, #tpu.memory_space<vmem>>, vector<2x32xf32>
    tpu.vector_store %arg14[%c4, %c0_52], %169 {strides = array<i32>} : memref<16x32xf32, #tpu.memory_space<vmem>>, vector<2x32xf32>,
    %171 = vector.extract_strided_slice %74 {offsets = [6, 0], sizes = [2, 96], strides = [1, 1]} : vector<16x96xf32> to vector<2x96xf32>
    %cst_53 = arith.constant dense<0.000000e+00> : vector<2x96xf32>
    %172 = tpu.matmul %169, %75, %cst_53 {dimension_numbers = #tpu.dot_dimension_numbers<[1], [0], [0], [1], [0, 0, 1, 1], [], []>} : vector<2x32xf32>, vector<32x96xf32>, vector<2x96xf32> -> vector<2x96xf32>
    %173 = vector.broadcast %76 : vector<1x96xf32> to vector<2x96xf32>
    %174 = arith.addf %172, %173 : vector<2x96xf32>
    %175 = vector.extract_strided_slice %171 {offsets = [0, 0], sizes = [2, 32], strides = [1, 1]} : vector<2x96xf32> to vector<2x32xf32>
    %176 = vector.extract_strided_slice %174 {offsets = [0, 0], sizes = [2, 32], strides = [1, 1]} : vector<2x96xf32> to vector<2x32xf32>
    %177 = arith.addf %175, %176 : vector<2x32xf32>
    %178 = arith.negf %177 : vector<2x32xf32>
    %179 = math.exp %178 : vector<2x32xf32>
    %cst_54 = arith.constant 1.000000e+00 : f32
    %180 = vector.broadcast %cst_54 : f32 to vector<2x32xf32>
    %181 = arith.addf %180, %179 : vector<2x32xf32>
    %182 = arith.divf %180, %181 : vector<2x32xf32>
    %183 = vector.extract_strided_slice %171 {offsets = [0, 32], sizes = [2, 32], strides = [1, 1]} : vector<2x96xf32> to vector<2x32xf32>
    %184 = vector.extract_strided_slice %174 {offsets = [0, 32], sizes = [2, 32], strides = [1, 1]} : vector<2x96xf32> to vector<2x32xf32>
    %185 = arith.addf %183, %184 : vector<2x32xf32>
    %186 = arith.negf %185 : vector<2x32xf32>
    %187 = math.exp %186 : vector<2x32xf32>
    %cst_55 = arith.constant 1.000000e+00 : f32
    %188 = vector.broadcast %cst_55 : f32 to vector<2x32xf32>
    %189 = arith.addf %188, %187 : vector<2x32xf32>
    %190 = arith.divf %188, %189 : vector<2x32xf32>
    %191 = vector.extract_strided_slice %171 {offsets = [0, 64], sizes = [2, 32], strides = [1, 1]} : vector<2x96xf32> to vector<2x32xf32>
    %192 = vector.extract_strided_slice %174 {offsets = [0, 64], sizes = [2, 32], strides = [1, 1]} : vector<2x96xf32> to vector<2x32xf32>
    %193 = arith.mulf %182, %192 : vector<2x32xf32>
    %194 = arith.addf %191, %193 : vector<2x32xf32>
    %195 = math.tanh %194 : vector<2x32xf32>
    %cst_56 = arith.constant 1.000000e+00 : f32
    %196 = vector.broadcast %cst_56 : f32 to vector<2x32xf32>
    %197 = arith.subf %196, %190 : vector<2x32xf32>
    %198 = arith.mulf %197, %195 : vector<2x32xf32>
    %199 = arith.mulf %190, %169 : vector<2x32xf32>
    %200 = arith.addf %198, %199 : vector<2x32xf32>
    %c6 = arith.constant 6 : index
    %c0_57 = arith.constant 0 : index
    %201 = vector.load %arg14[%c6, %c0_57] : memref<16x32xf32, #tpu.memory_space<vmem>>, vector<2x32xf32>
    tpu.vector_store %arg14[%c6, %c0_57], %200 {strides = array<i32>} : memref<16x32xf32, #tpu.memory_space<vmem>>, vector<2x32xf32>,
    %202 = vector.extract_strided_slice %74 {offsets = [8, 0], sizes = [2, 96], strides = [1, 1]} : vector<16x96xf32> to vector<2x96xf32>
    %cst_58 = arith.constant dense<0.000000e+00> : vector<2x96xf32>
    %203 = tpu.matmul %200, %75, %cst_58 {dimension_numbers = #tpu.dot_dimension_numbers<[1], [0], [0], [1], [0, 0, 1, 1], [], []>} : vector<2x32xf32>, vector<32x96xf32>, vector<2x96xf32> -> vector<2x96xf32>
    %204 = vector.broadcast %76 : vector<1x96xf32> to vector<2x96xf32>
    %205 = arith.addf %203, %204 : vector<2x96xf32>
    %206 = vector.extract_strided_slice %202 {offsets = [0, 0], sizes = [2, 32], strides = [1, 1]} : vector<2x96xf32> to vector<2x32xf32>
    %207 = vector.extract_strided_slice %205 {offsets = [0, 0], sizes = [2, 32], strides = [1, 1]} : vector<2x96xf32> to vector<2x32xf32>
    %208 = arith.addf %206, %207 : vector<2x32xf32>
    %209 = arith.negf %208 : vector<2x32xf32>
    %210 = math.exp %209 : vector<2x32xf32>
    %cst_59 = arith.constant 1.000000e+00 : f32
    %211 = vector.broadcast %cst_59 : f32 to vector<2x32xf32>
    %212 = arith.addf %211, %210 : vector<2x32xf32>
    %213 = arith.divf %211, %212 : vector<2x32xf32>
    %214 = vector.extract_strided_slice %202 {offsets = [0, 32], sizes = [2, 32], strides = [1, 1]} : vector<2x96xf32> to vector<2x32xf32>
    %215 = vector.extract_strided_slice %205 {offsets = [0, 32], sizes = [2, 32], strides = [1, 1]} : vector<2x96xf32> to vector<2x32xf32>
    %216 = arith.addf %214, %215 : vector<2x32xf32>
    %217 = arith.negf %216 : vector<2x32xf32>
    %218 = math.exp %217 : vector<2x32xf32>
    %cst_60 = arith.constant 1.000000e+00 : f32
    %219 = vector.broadcast %cst_60 : f32 to vector<2x32xf32>
    %220 = arith.addf %219, %218 : vector<2x32xf32>
    %221 = arith.divf %219, %220 : vector<2x32xf32>
    %222 = vector.extract_strided_slice %202 {offsets = [0, 64], sizes = [2, 32], strides = [1, 1]} : vector<2x96xf32> to vector<2x32xf32>
    %223 = vector.extract_strided_slice %205 {offsets = [0, 64], sizes = [2, 32], strides = [1, 1]} : vector<2x96xf32> to vector<2x32xf32>
    %224 = arith.mulf %213, %223 : vector<2x32xf32>
    %225 = arith.addf %222, %224 : vector<2x32xf32>
    %226 = math.tanh %225 : vector<2x32xf32>
    %cst_61 = arith.constant 1.000000e+00 : f32
    %227 = vector.broadcast %cst_61 : f32 to vector<2x32xf32>
    %228 = arith.subf %227, %221 : vector<2x32xf32>
    %229 = arith.mulf %228, %226 : vector<2x32xf32>
    %230 = arith.mulf %221, %200 : vector<2x32xf32>
    %231 = arith.addf %229, %230 : vector<2x32xf32>
    %c8 = arith.constant 8 : index
    %c0_62 = arith.constant 0 : index
    %232 = vector.load %arg14[%c8, %c0_62] : memref<16x32xf32, #tpu.memory_space<vmem>>, vector<2x32xf32>
    tpu.vector_store %arg14[%c8, %c0_62], %231 {strides = array<i32>} : memref<16x32xf32, #tpu.memory_space<vmem>>, vector<2x32xf32>,
    %233 = vector.extract_strided_slice %74 {offsets = [10, 0], sizes = [2, 96], strides = [1, 1]} : vector<16x96xf32> to vector<2x96xf32>
    %cst_63 = arith.constant dense<0.000000e+00> : vector<2x96xf32>
    %234 = tpu.matmul %231, %75, %cst_63 {dimension_numbers = #tpu.dot_dimension_numbers<[1], [0], [0], [1], [0, 0, 1, 1], [], []>} : vector<2x32xf32>, vector<32x96xf32>, vector<2x96xf32> -> vector<2x96xf32>
    %235 = vector.broadcast %76 : vector<1x96xf32> to vector<2x96xf32>
    %236 = arith.addf %234, %235 : vector<2x96xf32>
    %237 = vector.extract_strided_slice %233 {offsets = [0, 0], sizes = [2, 32], strides = [1, 1]} : vector<2x96xf32> to vector<2x32xf32>
    %238 = vector.extract_strided_slice %236 {offsets = [0, 0], sizes = [2, 32], strides = [1, 1]} : vector<2x96xf32> to vector<2x32xf32>
    %239 = arith.addf %237, %238 : vector<2x32xf32>
    %240 = arith.negf %239 : vector<2x32xf32>
    %241 = math.exp %240 : vector<2x32xf32>
    %cst_64 = arith.constant 1.000000e+00 : f32
    %242 = vector.broadcast %cst_64 : f32 to vector<2x32xf32>
    %243 = arith.addf %242, %241 : vector<2x32xf32>
    %244 = arith.divf %242, %243 : vector<2x32xf32>
    %245 = vector.extract_strided_slice %233 {offsets = [0, 32], sizes = [2, 32], strides = [1, 1]} : vector<2x96xf32> to vector<2x32xf32>
    %246 = vector.extract_strided_slice %236 {offsets = [0, 32], sizes = [2, 32], strides = [1, 1]} : vector<2x96xf32> to vector<2x32xf32>
    %247 = arith.addf %245, %246 : vector<2x32xf32>
    %248 = arith.negf %247 : vector<2x32xf32>
    %249 = math.exp %248 : vector<2x32xf32>
    %cst_65 = arith.constant 1.000000e+00 : f32
    %250 = vector.broadcast %cst_65 : f32 to vector<2x32xf32>
    %251 = arith.addf %250, %249 : vector<2x32xf32>
    %252 = arith.divf %250, %251 : vector<2x32xf32>
    %253 = vector.extract_strided_slice %233 {offsets = [0, 64], sizes = [2, 32], strides = [1, 1]} : vector<2x96xf32> to vector<2x32xf32>
    %254 = vector.extract_strided_slice %236 {offsets = [0, 64], sizes = [2, 32], strides = [1, 1]} : vector<2x96xf32> to vector<2x32xf32>
    %255 = arith.mulf %244, %254 : vector<2x32xf32>
    %256 = arith.addf %253, %255 : vector<2x32xf32>
    %257 = math.tanh %256 : vector<2x32xf32>
    %cst_66 = arith.constant 1.000000e+00 : f32
    %258 = vector.broadcast %cst_66 : f32 to vector<2x32xf32>
    %259 = arith.subf %258, %252 : vector<2x32xf32>
    %260 = arith.mulf %259, %257 : vector<2x32xf32>
    %261 = arith.mulf %252, %231 : vector<2x32xf32>
    %262 = arith.addf %260, %261 : vector<2x32xf32>
    %c10 = arith.constant 10 : index
    %c0_67 = arith.constant 0 : index
    %263 = vector.load %arg14[%c10, %c0_67] : memref<16x32xf32, #tpu.memory_space<vmem>>, vector<2x32xf32>
    tpu.vector_store %arg14[%c10, %c0_67], %262 {strides = array<i32>} : memref<16x32xf32, #tpu.memory_space<vmem>>, vector<2x32xf32>,
    %264 = vector.extract_strided_slice %74 {offsets = [12, 0], sizes = [2, 96], strides = [1, 1]} : vector<16x96xf32> to vector<2x96xf32>
    %cst_68 = arith.constant dense<0.000000e+00> : vector<2x96xf32>
    %265 = tpu.matmul %262, %75, %cst_68 {dimension_numbers = #tpu.dot_dimension_numbers<[1], [0], [0], [1], [0, 0, 1, 1], [], []>} : vector<2x32xf32>, vector<32x96xf32>, vector<2x96xf32> -> vector<2x96xf32>
    %266 = vector.broadcast %76 : vector<1x96xf32> to vector<2x96xf32>
    %267 = arith.addf %265, %266 : vector<2x96xf32>
    %268 = vector.extract_strided_slice %264 {offsets = [0, 0], sizes = [2, 32], strides = [1, 1]} : vector<2x96xf32> to vector<2x32xf32>
    %269 = vector.extract_strided_slice %267 {offsets = [0, 0], sizes = [2, 32], strides = [1, 1]} : vector<2x96xf32> to vector<2x32xf32>
    %270 = arith.addf %268, %269 : vector<2x32xf32>
    %271 = arith.negf %270 : vector<2x32xf32>
    %272 = math.exp %271 : vector<2x32xf32>
    %cst_69 = arith.constant 1.000000e+00 : f32
    %273 = vector.broadcast %cst_69 : f32 to vector<2x32xf32>
    %274 = arith.addf %273, %272 : vector<2x32xf32>
    %275 = arith.divf %273, %274 : vector<2x32xf32>
    %276 = vector.extract_strided_slice %264 {offsets = [0, 32], sizes = [2, 32], strides = [1, 1]} : vector<2x96xf32> to vector<2x32xf32>
    %277 = vector.extract_strided_slice %267 {offsets = [0, 32], sizes = [2, 32], strides = [1, 1]} : vector<2x96xf32> to vector<2x32xf32>
    %278 = arith.addf %276, %277 : vector<2x32xf32>
    %279 = arith.negf %278 : vector<2x32xf32>
    %280 = math.exp %279 : vector<2x32xf32>
    %cst_70 = arith.constant 1.000000e+00 : f32
    %281 = vector.broadcast %cst_70 : f32 to vector<2x32xf32>
    %282 = arith.addf %281, %280 : vector<2x32xf32>
    %283 = arith.divf %281, %282 : vector<2x32xf32>
    %284 = vector.extract_strided_slice %264 {offsets = [0, 64], sizes = [2, 32], strides = [1, 1]} : vector<2x96xf32> to vector<2x32xf32>
    %285 = vector.extract_strided_slice %267 {offsets = [0, 64], sizes = [2, 32], strides = [1, 1]} : vector<2x96xf32> to vector<2x32xf32>
    %286 = arith.mulf %275, %285 : vector<2x32xf32>
    %287 = arith.addf %284, %286 : vector<2x32xf32>
    %288 = math.tanh %287 : vector<2x32xf32>
    %cst_71 = arith.constant 1.000000e+00 : f32
    %289 = vector.broadcast %cst_71 : f32 to vector<2x32xf32>
    %290 = arith.subf %289, %283 : vector<2x32xf32>
    %291 = arith.mulf %290, %288 : vector<2x32xf32>
    %292 = arith.mulf %283, %262 : vector<2x32xf32>
    %293 = arith.addf %291, %292 : vector<2x32xf32>
    %c12 = arith.constant 12 : index
    %c0_72 = arith.constant 0 : index
    %294 = vector.load %arg14[%c12, %c0_72] : memref<16x32xf32, #tpu.memory_space<vmem>>, vector<2x32xf32>
    tpu.vector_store %arg14[%c12, %c0_72], %293 {strides = array<i32>} : memref<16x32xf32, #tpu.memory_space<vmem>>, vector<2x32xf32>,
    %295 = vector.extract_strided_slice %74 {offsets = [14, 0], sizes = [2, 96], strides = [1, 1]} : vector<16x96xf32> to vector<2x96xf32>
    %cst_73 = arith.constant dense<0.000000e+00> : vector<2x96xf32>
    %296 = tpu.matmul %293, %75, %cst_73 {dimension_numbers = #tpu.dot_dimension_numbers<[1], [0], [0], [1], [0, 0, 1, 1], [], []>} : vector<2x32xf32>, vector<32x96xf32>, vector<2x96xf32> -> vector<2x96xf32>
    %297 = vector.broadcast %76 : vector<1x96xf32> to vector<2x96xf32>
    %298 = arith.addf %296, %297 : vector<2x96xf32>
    %299 = vector.extract_strided_slice %295 {offsets = [0, 0], sizes = [2, 32], strides = [1, 1]} : vector<2x96xf32> to vector<2x32xf32>
    %300 = vector.extract_strided_slice %298 {offsets = [0, 0], sizes = [2, 32], strides = [1, 1]} : vector<2x96xf32> to vector<2x32xf32>
    %301 = arith.addf %299, %300 : vector<2x32xf32>
    %302 = arith.negf %301 : vector<2x32xf32>
    %303 = math.exp %302 : vector<2x32xf32>
    %cst_74 = arith.constant 1.000000e+00 : f32
    %304 = vector.broadcast %cst_74 : f32 to vector<2x32xf32>
    %305 = arith.addf %304, %303 : vector<2x32xf32>
    %306 = arith.divf %304, %305 : vector<2x32xf32>
    %307 = vector.extract_strided_slice %295 {offsets = [0, 32], sizes = [2, 32], strides = [1, 1]} : vector<2x96xf32> to vector<2x32xf32>
    %308 = vector.extract_strided_slice %298 {offsets = [0, 32], sizes = [2, 32], strides = [1, 1]} : vector<2x96xf32> to vector<2x32xf32>
    %309 = arith.addf %307, %308 : vector<2x32xf32>
    %310 = arith.negf %309 : vector<2x32xf32>
    %311 = math.exp %310 : vector<2x32xf32>
    %cst_75 = arith.constant 1.000000e+00 : f32
    %312 = vector.broadcast %cst_75 : f32 to vector<2x32xf32>
    %313 = arith.addf %312, %311 : vector<2x32xf32>
    %314 = arith.divf %312, %313 : vector<2x32xf32>
    %315 = vector.extract_strided_slice %295 {offsets = [0, 64], sizes = [2, 32], strides = [1, 1]} : vector<2x96xf32> to vector<2x32xf32>
    %316 = vector.extract_strided_slice %298 {offsets = [0, 64], sizes = [2, 32], strides = [1, 1]} : vector<2x96xf32> to vector<2x32xf32>
    %317 = arith.mulf %306, %316 : vector<2x32xf32>
    %318 = arith.addf %315, %317 : vector<2x32xf32>
    %319 = math.tanh %318 : vector<2x32xf32>
    %cst_76 = arith.constant 1.000000e+00 : f32
    %320 = vector.broadcast %cst_76 : f32 to vector<2x32xf32>
    %321 = arith.subf %320, %314 : vector<2x32xf32>
    %322 = arith.mulf %321, %319 : vector<2x32xf32>
    %323 = arith.mulf %314, %293 : vector<2x32xf32>
    %324 = arith.addf %322, %323 : vector<2x32xf32>
    %c14 = arith.constant 14 : index
    %c0_77 = arith.constant 0 : index
    %325 = vector.load %arg14[%c14, %c0_77] : memref<16x32xf32, #tpu.memory_space<vmem>>, vector<2x32xf32>
    tpu.vector_store %arg14[%c14, %c0_77], %324 {strides = array<i32>} : memref<16x32xf32, #tpu.memory_space<vmem>>, vector<2x32xf32>,
    %c0_78 = arith.constant 0 : index
    %c0_79 = arith.constant 0 : index
    %326 = vector.load %arg14[%c0_78, %c0_79] : memref<16x32xf32, #tpu.memory_space<vmem>>, vector<16x32xf32>
    %c0_80 = arith.constant 0 : index
    %c0_81 = arith.constant 0 : index
    %327 = vector.load %arg11[%c0_80, %c0_81] : memref<32x16xf32, #tpu.memory_space<vmem>>, vector<32x16xf32>
    %cst_82 = arith.constant dense<0.000000e+00> : vector<16x16xf32>
    %328 = tpu.matmul %326, %327, %cst_82 {dimension_numbers = #tpu.dot_dimension_numbers<[1], [0], [0], [1], [0, 0, 1, 1], [], []>} : vector<16x32xf32>, vector<32x16xf32>, vector<16x16xf32> -> vector<16x16xf32>
    %c0_83 = arith.constant 0 : index
    %c0_84 = arith.constant 0 : index
    %329 = vector.load %arg12[%c0_83, %c0_84] : memref<1x16xf32, #tpu.memory_space<vmem>>, vector<1x16xf32>
    %330 = vector.broadcast %329 : vector<1x16xf32> to vector<16x16xf32>
    %331 = arith.addf %328, %330 : vector<16x16xf32>
    %c0_85 = arith.constant 0 : index
    %c0_86 = arith.constant 0 : index
    %332 = vector.load %arg13[%c0_85, %c0_86] : memref<16x16xf32, #tpu.memory_space<vmem>>, vector<16x16xf32>
    tpu.vector_store %arg13[%c0_85, %c0_86], %331 {strides = array<i32>} : memref<16x16xf32, #tpu.memory_space<vmem>>, vector<16x16xf32>,
    return
  }
}

</mosaic_0001>

<bundles_post_ra>
// kernel: zencoder_forward.1
= control target key start
LH: loop header
LB: loop body
LE: loop exit
PB: predicated region body
PF: predicated region fallthrough
CT: control target
= control target key end

     0   :  { %18 = vsyncpa [#allocation4], 0  ;;  %s2960_s0 = inlined_call_operand.vmem [shape: f32[16,256], index: 0, kind: input, shape index: {}]   ;;  %s2961_s1 = inlined_call_operand.vmem [shape: f32[256,256], index: 1, kind: input, shape index: {}]   ;;  %s2962_s2 = inlined_call_operand.vmem [shape: f32[256,32], index: 2, kind: input, shape index: {}]   ;;  %s2963_s3 = inlined_call_operand.vmem [shape: f32[32,16], index: 3, kind: input, shape index: {}]   ;;  %s2964_s4 = inlined_call_operand.hbm [shape: f32[16,16], index: 4, kind: input, shape index: {}]   ;;  %s2965_s5 = inlined_call_operand.vmem [shape: f32[8,16], index: 5, kind: input, shape index: {}]   ;;  %s2966_s6 = inlined_call_operand.hbm [shape: f32[8,16], index: 6, kind: input, shape index: {}]   ;;  %s2967_s7 = inlined_call_operand.hbm [shape: f32[16,96], index: 7, kind: input, shape index: {}]   ;;  %s2968_s8 = inlined_call_operand.hbm [shape: f32[32,96], index: 8, kind: input, shape index: {}]   ;;  %s2969_s9 = inlined_call_operand.vmem [shape: f32[1,96], index: 9, kind: input, shape index: {}]   ;;  %s2970_s10 = inlined_call_operand.vmem [shape: f32[1,96], index: 10, kind: input, shape index: {}]   ;;  %s2971_s11 = inlined_call_operand.vmem [shape: f32[32,16], index: 11, kind: input, shape index: {}]   ;;  %s2972_s12 = inlined_call_operand.vmem [shape: f32[1,16], index: 12, kind: input, shape index: {}]   ;;  %s2973_s13 = inlined_call_operand.hbm [shape: f32[16,16], index: 13, kind: output, shape index: {}]  }
   0x1   :  { %19 = vsyncpa [#allocation7], 0 }
   0x2   :  { %20 = vsyncpa [#allocation10], 0 }
   0x3   :  { %21 = vsyncpa [#allocation5], 0  ;;  %s2288_s25 = smov [#allocation6]   ;;  %s2289_s27 = smov [#allocation3]  }
   0x4   :  { %s50_s26 = sshll.u32 %s2288_s25, 4  ;;  %s35_s28 = sshll.u32 %s2289_s27, 4  ;;  %s51_s26 = int_to_ptr.vmem [resolvable:$true] %s50_s26  ;;  %s2370_s28 = int_to_ptr.vmem [resolvable:$true] %s35_s28 }
   0x5   :  { %s2170_s14 = scalar_lea.hbm %s2966_s6, 128 }
   0x6   :  { %p2171_p0 = scmp.ne.s32.totalorder %s2966_s6, %s2170_s14  ;;  %p2174_p1 = scmp.lt.u32.totalorder %s2170_s14, %s2966_s6 }
   0x8   :  { %p2176_p2 = pnand %p2174_p1, %p2171_p0 }
   0xa   :  { %2179 = shalt.err (!%p2176_p2)
}
   0xb   :  { %s2180_s19 = scalar_lea.vmem %s51_s26, 128  ;;  %p2185_p4 = scmp.lt.s32.totalorder %s51_s26, %s51_s26 }
   0xc   :  { %p2181_p3 = scmp.ne.s32.totalorder %s51_s26, %s2180_s19  ;;  %p2186_p5 = scmp.lt.s32.totalorder %s2180_s19, %s2180_s19 }
   0xe   :  { %p2187_p6 = por %p2186_p5, %p2185_p4 }
  0x10   :  { %p2188_p7 = pnand %p2187_p6, %p2181_p3 }
  0x12   :  { %2191 = shalt.err (!%p2188_p7)
}
  0x13   :  { %53 = dma.hbm_to_vmem [thread:$0]  %s2966_s6, 128, %s51_s26, [#allocation7]  }
  0x14   :  { %s2192_s24 = scalar_lea.hbm %s2964_s4, 256 }
  0x15   :  { %p2193_p8 = scmp.ne.s32.totalorder %s2964_s4, %s2192_s24  ;;  %p2196_p9 = scmp.lt.u32.totalorder %s2192_s24, %s2964_s4 }
  0x17   :  { %p2198_p10 = pnand %p2196_p9, %p2193_p8 }
  0x19   :  { %2201 = shalt.err (!%p2198_p10)
}
  0x1a   :  { %s2202_s14 = scalar_lea.vmem %s2370_s28, 256  ;;  %p2207_p12 = scmp.lt.s32.totalorder %s2370_s28, %s2370_s28 }
  0x1b   :  { %p2203_p11 = scmp.ne.s32.totalorder %s2370_s28, %s2202_s14  ;;  %p2208_p13 = scmp.lt.s32.totalorder %s2202_s14, %s2202_s14 }
  0x1d   :  { %p2209_p0 = por %p2208_p13, %p2207_p12 }
  0x1f   :  { %p2210_p1 = pnand %p2209_p0, %p2203_p11 }
  0x21   :  { %2213 = shalt.err (!%p2210_p1)
}
  0x22   :  { %s2290_s6 = smov 128   ;;  %s2291_s26 = smov 8  }
  0x23   :  { %41 = dma.hbm_to_vmem [thread:$0]  %s2964_s4, 256, %s2370_s28, [#allocation4], %s2290_s6, %s2290_s6, %s2291_s26  }
  0x24   :  { %s2292_s17 = smov [#allocation8]   ;;  %s2293_s19 = smov [#allocation9]  }
  0x25   :  { %s59_s18 = sshll.u32 %s2292_s17, 4  ;;  %s71_s20 = sshll.u32 %s2293_s19, 4  ;;  %s60_s18 = int_to_ptr.vmem [resolvable:$true] %s59_s18  ;;  %s2404_s20 = int_to_ptr.vmem [resolvable:$true] %s71_s20 }
  0x26   :  { %s2214_s23 = scalar_lea.hbm %s2967_s7, 256 }
  0x27   :  { %p2215_p2 = scmp.ne.s32.totalorder %s2967_s7, %s2214_s23  ;;  %p2218_p3 = scmp.lt.u32.totalorder %s2214_s23, %s2967_s7 }
  0x29   :  { %p2220_p4 = pnand %p2218_p3, %p2215_p2 }
  0x2b   :  { %2223 = shalt.err (!%p2220_p4)
}
  0x2c   :  { %s2224_s4 = scalar_lea.vmem %s60_s18, 256  ;;  %p2229_p6 = scmp.lt.s32.totalorder %s60_s18, %s60_s18 }
  0x2d   :  { %p2225_p5 = scmp.ne.s32.totalorder %s60_s18, %s2224_s4  ;;  %p2230_p7 = scmp.lt.s32.totalorder %s2224_s4, %s2224_s4 }
  0x2f   :  { %p2231_p8 = por %p2230_p7, %p2229_p6 }
  0x31   :  { %p2232_p9 = pnand %p2231_p8, %p2225_p5 }
  0x33   :  { %2235 = shalt.err (!%p2232_p9)
}
  0x34   :  { %65 = dma.hbm_to_vmem [thread:$0]  %s2967_s7, 256, %s60_s18, [#allocation7], %s2290_s6, %s2290_s6, %s2291_s26  }
  0x35   :  { %s2236_s16 = scalar_lea.hbm %s2968_s8, 512 }
  0x36   :  { %p2237_p10 = scmp.ne.s32.totalorder %s2968_s8, %s2236_s16  ;;  %p2240_p11 = scmp.lt.u32.totalorder %s2236_s16, %s2968_s8 }
  0x38   :  { %p2242_p12 = pnand %p2240_p11, %p2237_p10 }
  0x3a   :  { %2245 = shalt.err (!%p2242_p12)
}
  0x3b   :  { %s2246_s23 = scalar_lea.vmem %s2404_s20, 512  ;;  %p2251_p0 = scmp.lt.s32.totalorder %s2404_s20, %s2404_s20 }
  0x3c   :  { %p2247_p13 = scmp.ne.s32.totalorder %s2404_s20, %s2246_s23  ;;  %p2252_p1 = scmp.lt.s32.totalorder %s2246_s23, %s2246_s23 }
  0x3e   :  { %p2253_p2 = por %p2252_p1, %p2251_p0 }
  0x40   :  { %p2254_p3 = pnand %p2253_p2, %p2247_p13 }
  0x42   :  { %2257 = shalt.err (!%p2254_p3)
}
  0x43   :  { %77 = dma.hbm_to_vmem [thread:$0]  %s2968_s8, 512, %s2404_s20, [#allocation10], %s2290_s6, %s2290_s6, %s2291_s26  }
  0x44   :  { %2280 = dma.done.wait [#allocation4], 256  }
  0x45   :  { %2281 = vsyncadd [#allocation4], 4294967040 }
  0x46   :  { %2282 = dma.done.wait [#allocation7], 384  }
  0x47   :  { %2283 = vsyncadd [#allocation7], 4294966912 }
  0x48   :  { %2284 = dma.done.wait [#allocation10], 512  }
  0x49   :  { %2285 = vsyncadd [#allocation10], 4294966784  ;;  %v103_v0 = vld [vmem:[%s2961_s1 + $0x8] sm:$0xff]  ;;  %v105_v1 = vld [vmem:[%s2961_s1 + $0x18] sm:$0xff]  ;;  %vm362_vm0 = vcmask 261120   ;;  %vm446_vm1 = vcmask 130048  }
  0x4a   :  { %v102_v2 = vld [vmem:[%s2961_s1] sm:$0xff]  ;;  %v1926_v3 = vpack.c.bf16 %v105_v1, %v103_v0  ;;  %v104_v4 = vld [vmem:[%s2961_s1 + $0x10] sm:$0xff]  ;;  %v107_v5 = vld [vmem:[%s2961_s1 + $0x28] sm:$0xff]  ;;  %vm2295_vm2 = vmmov 0   ;;  %s2297_s29 = smov 64   ;;  %vm797_vm3 = vcmask 254976  }
  0x4b   :  { %v109_v6 = vld [vmem:[%s2961_s1 + $0x38] sm:$0xff]  ;;  %v1928_v7 = vpack.c.bf16 %v104_v4, %v102_v2  ;;  %v106_v9 = vld [vmem:[%s2961_s1 + $0x20] sm:$0xff]  ;;  %v108_v10 = vld [vmem:[%s2961_s1 + $0x30] sm:$0xff]  ;;  %vm905_vm4 = vcmask 257026   ;;  %vm1127_vm5 = vcmask 261126   ;;  %vm1016_vm6 = vcmask 259076  }
  0x4c   :  { %v1930_v8 = vpack.c.bf16 %v109_v6, %v107_v5  ;;  %v111_v11 = vld [vmem:[%s2961_s1 + $0x48] sm:$0xff]  ;;  %1927 = vmatprep.subr.bf16.mxu0 %v1926_v3  ;;  %v113_v12 = vld [vmem:[%s2961_s1 + $0x58] sm:$0xff]  ;;  %v1932_v13 = vpack.c.bf16 %v108_v10, %v106_v9  ;;  %v110_v15 = vld [vmem:[%s2961_s1 + $0x40] sm:$0xff]  ;;  %s2299_s15 = smov [#allocation11]  }
  0x4d   :  { %1929 = vmatpush1.bf16.msra.mxu0 %v1928_v7  ;;  %v1934_v14 = vpack.c.bf16 %v113_v12, %v111_v11  ;;  %v112_v16 = vld [vmem:[%s2961_s1 + $0x50] sm:$0xff]  ;;  %v115_v17 = vld [vmem:[%s2961_s1 + $0x68] sm:$0xff]  ;;  %v117_v18 = vld [vmem:[%s2961_s1 + $0x78] sm:$0xff]  ;;  %s1664_s16 = sshll.u32 %s2299_s15, 4  ;;  %s1665_s16 = int_to_ptr.vmem [resolvable:$true] %s1664_s16 }
  0x4e   :  { %1931 = vmatprep.subr.bf16.mxu0 %v1930_v8  ;;  %v1936_v19 = vpack.c.bf16 %v112_v16, %v110_v15  ;;  %v1938_v20 = vpack.c.bf16 %v117_v18, %v115_v17  ;;  %v114_v21 = vld [vmem:[%s2961_s1 + $0x60] sm:$0xff]  ;;  %v116_v22 = vld [vmem:[%s2961_s1 + $0x70] sm:$0xff]  ;;  %v119_v23 = vld [vmem:[%s2961_s1 + $0x88] sm:$0xff]  ;;  %s2258_s17 = scalar_lea.vmem %s1665_s16, 256  ;;  %p2263_p5 = scmp.lt.s32.totalorder %s1665_s16, %s1665_s16 }
  0x4f   :  { %v121_v24 = vld [vmem:[%s2961_s1 + $0x98] sm:$0xff]  ;;  %v1940_v25 = vpack.c.bf16 %v116_v22, %v114_v21  ;;  %v118_v27 = vld [vmem:[%s2961_s1 + $0x80] sm:$0xff]  ;;  %v120_v28 = vld [vmem:[%s2961_s1 + $0x90] sm:$0xff]  ;;  %p2259_p4 = scmp.ne.s32.totalorder %s1665_s16, %s2258_s17  ;;  %p2264_p6 = scmp.lt.s32.totalorder %s2258_s17, %s2258_s17 }
  0x50   :  { %v1942_v26 = vpack.c.bf16 %v121_v24, %v119_v23  ;;  %v123_v29 = vld [vmem:[%s2961_s1 + $0xa8] sm:$0xff]  ;;  %v125_v30 = vld [vmem:[%s2961_s1 + $0xb8] sm:$0xff]  ;;  %v1944_v31 = vpack.c.bf16 %v120_v28, %v118_v27  ;;  %v122_v33 = vld [vmem:[%s2961_s1 + $0xa0] sm:$0xff] }
  0x51   :  { %1933 = vmatpush1.bf16.msra.mxu0 %v1932_v13  ;;  %v1946_v32 = vpack.c.bf16 %v125_v30, %v123_v29  ;;  %v124_v34 = vld [vmem:[%s2961_s1 + $0xb0] sm:$0xff]  ;;  %v127_v35 = vld [vmem:[%s2961_s1 + $0xc8] sm:$0xff]  ;;  %v129_v36 = vld [vmem:[%s2961_s1 + $0xd8] sm:$0xff]  ;;  %p2265_p7 = por %p2264_p6, %p2263_p5 }
  0x52   :  { %1935 = vmatprep.subr.bf16.mxu0 %v1934_v14  ;;  %v1948_v37 = vpack.c.bf16 %v124_v34, %v122_v33  ;;  %v1950_v38 = vpack.c.bf16 %v129_v36, %v127_v35  ;;  %v126_v39 = vld [vmem:[%s2961_s1 + $0xc0] sm:$0xff]  ;;  %v128_v40 = vld [vmem:[%s2961_s1 + $0xd0] sm:$0xff]  ;;  %v99_v41 = vld [vmem:[%s2960_s0 + $0x8] sm:$0xff] }
  0x53   :  { %v131_v42 = vld [vmem:[%s2961_s1 + $0xe8] sm:$0xff]  ;;  %v133_v43 = vld [vmem:[%s2961_s1 + $0xf8] sm:$0xff]  ;;  %230 = vmatprep.mubr.f32.mxu0 %v99_v41  ;;  %v263_v44 = vld [vmem:[%s2962_s2 + $0x80] sm:$0xff]  ;;  %v1952_v50 = vpack.c.bf16 %v128_v40, %v126_v39  ;;  %p2266_p8 = pnand %p2265_p7, %p2259_p4 }
  0x54   :  { %v130_v45 = vld [vmem:[%s2961_s1 + $0xe0] sm:$0xff]  ;;  %v132_v46 = vld [vmem:[%s2961_s1 + $0xf0] sm:$0xff]  ;;  %v264_v47 = vld [vmem:[%s2962_s2 + $0x88] sm:$0xff]  ;;  %v1954_v56 = vpack.c.bf16 %v133_v43, %v131_v42 }
  0x55   :  { %1937 = vmatpush1.bf16.msra.mxu0 %v1936_v19  ;;  %v247_v48 = vld [vmem:[%s2962_s2] sm:$0xff]  ;;  %v248_v49 = vld [vmem:[%s2962_s2 + $0x8] sm:$0xff]  ;;  %v1990_v51 = vpack.c.bf16 %v264_v47, %v263_v44  ;;  %v265_v53 = vld [vmem:[%s2962_s2 + $0x90] sm:$0xff]  ;;  %v1956_v0 = vpack.c.bf16 %v132_v46, %v130_v45 }
  0x56   :  { %1939 = vmatprep.subr.bf16.mxu0 %v1938_v20  ;;  %v1992_v52 = vpack.c.bf16 %v248_v49, %v247_v48  ;;  %v266_v54 = vld [vmem:[%s2962_s2 + $0x98] sm:$0xff]  ;;  %v249_v55 = vld [vmem:[%s2962_s2 + $0x10] sm:$0xff]  ;;  %v267_v59 = vld [vmem:[%s2962_s2 + $0xa0] sm:$0xff] }
  0x57   :  { %v1994_v57 = vpack.c.bf16 %v266_v54, %v265_v53  ;;  %v250_v58 = vld [vmem:[%s2962_s2 + $0x18] sm:$0xff]  ;;  %v268_v60 = vld [vmem:[%s2962_s2 + $0xa8] sm:$0xff]  ;;  %1991 = vmatprep.subr.bf16.mxu1 %v1990_v51  ;;  %v134_v1 = vld [vmem:[%s2961_s1 + $0x100] sm:$0xff] }
  0x58   :  { %v135_v61 = vld [vmem:[%s2961_s1 + $0x108] sm:$0xff]  ;;  %v137_v62 = vld [vmem:[%s2961_s1 + $0x118] sm:$0xff]  ;;  %1993 = vmatpush3.bf16.msra.mxu1 %v1992_v52  ;;  %v1996_v63 = vpack.c.bf16 %v250_v58, %v249_v55  ;;  %v1998_v2 = vpack.c.bf16 %v268_v60, %v267_v59  ;;  %v251_v3 = vld [vmem:[%s2962_s2 + $0x20] sm:$0xff] }
  0x59   :  { %1941 = vmatpush1.bf16.msra.mxu0 %v1940_v25  ;;  %1995 = vmatprep.subr.bf16.mxu1 %v1994_v57  ;;  %v252_v4 = vld [vmem:[%s2962_s2 + $0x28] sm:$0xff]  ;;  %v1958_v5 = vpack.c.bf16 %v137_v62, %v135_v61  ;;  %v136_v6 = vld [vmem:[%s2961_s1 + $0x110] sm:$0xff]  ;;  %v270_v8 = vld [vmem:[%s2962_s2 + $0xb8] sm:$0xff] }
  0x5a   :  { %1943 = vmatprep.subr.bf16.mxu0 %v1942_v26  ;;  %v269_v7 = vld [vmem:[%s2962_s2 + $0xb0] sm:$0xff]  ;;  %v139_v9 = vld [vmem:[%s2961_s1 + $0x128] sm:$0xff]  ;;  %v141_v10 = vld [vmem:[%s2961_s1 + $0x138] sm:$0xff]  ;;  %v2000_v11 = vpack.c.bf16 %v252_v4, %v251_v3  ;;  %v1960_v12 = vpack.c.bf16 %v136_v6, %v134_v1 }
  0x5b   :  { %v138_v13 = vld [vmem:[%s2961_s1 + $0x120] sm:$0xff]  ;;  %v2002_v14 = vpack.c.bf16 %v270_v8, %v269_v7  ;;  %v253_v15 = vld [vmem:[%s2962_s2 + $0x30] sm:$0xff]  ;;  %v254_v16 = vld [vmem:[%s2962_s2 + $0x38] sm:$0xff]  ;;  %v1962_v17 = vpack.c.bf16 %v141_v10, %v139_v9 }
  0x5c   :  { %1997 = vmatpush3.bf16.msra.mxu1 %v1996_v63  ;;  %v140_v18 = vld [vmem:[%s2961_s1 + $0x130] sm:$0xff]  ;;  %v271_v19 = vld [vmem:[%s2962_s2 + $0xc0] sm:$0xff]  ;;  %v272_v20 = vld [vmem:[%s2962_s2 + $0xc8] sm:$0xff]  ;;  %v2004_v23 = vpack.c.bf16 %v254_v16, %v253_v15 }
  0x5d   :  { %1945 = vmatpush1.bf16.msra.mxu0 %v1944_v31  ;;  %1999 = vmatprep.subr.bf16.mxu1 %v1998_v2  ;;  %v143_v21 = vld [vmem:[%s2961_s1 + $0x148] sm:$0xff]  ;;  %v145_v22 = vld [vmem:[%s2961_s1 + $0x158] sm:$0xff]  ;;  %v1964_v24 = vpack.c.bf16 %v140_v18, %v138_v13  ;;  %v142_v25 = vld [vmem:[%s2961_s1 + $0x140] sm:$0xff]  ;;  %v2006_v26 = vpack.c.bf16 %v272_v20, %v271_v19 }
  0x5e   :  { %1947 = vmatprep.subr.bf16.mxu0 %v1946_v32  ;;  %v255_v27 = vld [vmem:[%s2962_s2 + $0x40] sm:$0xff]  ;;  %v256_v28 = vld [vmem:[%s2962_s2 + $0x48] sm:$0xff]  ;;  %v1966_v29 = vpack.c.bf16 %v145_v22, %v143_v21  ;;  %v144_v30 = vld [vmem:[%s2961_s1 + $0x150] sm:$0xff] }
  0x5f   :  { %v273_v31 = vld [vmem:[%s2962_s2 + $0xd0] sm:$0xff]  ;;  %v274_v32 = vld [vmem:[%s2962_s2 + $0xd8] sm:$0xff]  ;;  %v147_v33 = vld [vmem:[%s2961_s1 + $0x168] sm:$0xff]  ;;  %v2008_v35 = vpack.c.bf16 %v256_v28, %v255_v27  ;;  %v1968_v36 = vpack.c.bf16 %v144_v30, %v142_v25 }
  0x60   :  { %2001 = vmatpush3.bf16.msra.mxu1 %v2000_v11  ;;  %v149_v34 = vld [vmem:[%s2961_s1 + $0x178] sm:$0xff]  ;;  %v257_v39 = vld [vmem:[%s2962_s2 + $0x50] sm:$0xff]  ;;  %v275_v43 = vld [vmem:[%s2962_s2 + $0xe0] sm:$0xff] }
  0x61   :  { %1949 = vmatpush1.bf16.msra.mxu0 %v1948_v37  ;;  %2003 = vmatprep.subr.bf16.mxu1 %v2002_v14  ;;  %v146_v37 = vld [vmem:[%s2961_s1 + $0x160] sm:$0xff]  ;;  %v258_v40 = vld [vmem:[%s2962_s2 + $0x58] sm:$0xff]  ;;  %v1970_v41 = vpack.c.bf16 %v149_v34, %v147_v33  ;;  %v148_v42 = vld [vmem:[%s2961_s1 + $0x170] sm:$0xff] }
  0x62   :  { %1951 = vmatprep.subr.bf16.mxu0 %v1950_v38  ;;  %v2010_v38 = vpack.c.bf16 %v274_v32, %v273_v31  ;;  %v276_v44 = vld [vmem:[%s2962_s2 + $0xe8] sm:$0xff]  ;;  %v153_v46 = vld [vmem:[%s2961_s1 + $0x198] sm:$0xff]  ;;  %v2012_v47 = vpack.c.bf16 %v258_v40, %v257_v39  ;;  %v1972_v48 = vpack.c.bf16 %v148_v42, %v146_v37  ;;  %v150_v53 = vld [vmem:[%s2961_s1 + $0x180] sm:$0xff] }
  0x63   :  { %v151_v45 = vld [vmem:[%s2961_s1 + $0x188] sm:$0xff]  ;;  %v2014_v49 = vpack.c.bf16 %v276_v44, %v275_v43  ;;  %v152_v54 = vld [vmem:[%s2961_s1 + $0x190] sm:$0xff]  ;;  %v154_v60 = vld [vmem:[%s2961_s1 + $0x1a0] sm:$0xff] }
  0x64   :  { %2005 = vmatpush3.bf16.msra.mxu1 %v2004_v23  ;;  %v260_v51 = vld [vmem:[%s2962_s2 + $0x68] sm:$0xff]  ;;  %v1974_v52 = vpack.c.bf16 %v153_v46, %v151_v45  ;;  %v1976_v58 = vpack.c.bf16 %v152_v54, %v150_v53  ;;  %v156_v61 = vld [vmem:[%s2961_s1 + $0x1b0] sm:$0xff]  ;;  %v161_v63 = vld [vmem:[%s2961_s1 + $0x1d8] sm:$0xff] }
  0x65   :  { %1953 = vmatpush1.bf16.msra.mxu0 %v1952_v50  ;;  %2007 = vmatprep.subr.bf16.mxu1 %v2006_v26  ;;  %v259_v50 = vld [vmem:[%s2962_s2 + $0x60] sm:$0xff]  ;;  %v155_v55 = vld [vmem:[%s2961_s1 + $0x1a8] sm:$0xff]  ;;  %v160_v3 = vld [vmem:[%s2961_s1 + $0x1d0] sm:$0xff] }
  0x66   :  { %1955 = vmatprep.subr.bf16.mxu0 %v1954_v56  ;;  %v157_v56 = vld [vmem:[%s2961_s1 + $0x1b8] sm:$0xff]  ;;  %v2016_v57 = vpack.c.bf16 %v260_v51, %v259_v50  ;;  %v159_v62 = vld [vmem:[%s2961_s1 + $0x1c8] sm:$0xff]  ;;  %v158_v2 = vld [vmem:[%s2961_s1 + $0x1c0] sm:$0xff] }
  0x67   :  { %v1978_v59 = vpack.c.bf16 %v157_v56, %v155_v55  ;;  %v1982_v1 = vpack.c.bf16 %v161_v63, %v159_v62  ;;  %v163_v4 = vld [vmem:[%s2961_s1 + $0x1e8] sm:$0xff]  ;;  %v1984_v6 = vpack.c.bf16 %v160_v3, %v158_v2  ;;  %v162_v8 = vld [vmem:[%s2961_s1 + $0x1e0] sm:$0xff]  ;;  %v164_v9 = vld [vmem:[%s2961_s1 + $0x1f0] sm:$0xff] }
  0x68   :  { %2009 = vmatpush3.bf16.msra.mxu1 %v2008_v35  ;;  %v1988_v10 = vpack.c.bf16 %v164_v9, %v162_v8  ;;  %v98_v11 = vld [vmem:[%s2960_s0] sm:$0xff]  ;;  %v100_v13 = vld [vmem:[%s2960_s0 + $0x10] sm:$0xff]  ;;  %v278_v15 = vld [vmem:[%s2962_s2 + $0xf8] sm:$0xff] }
  0x69   :  { %1957 = vmatpush1.bf16.msra.mxu0 %v1956_v0  ;;  %2011 = vmatprep.subr.bf16.mxu1 %v2010_v38  ;;  %v1980_v0 = vpack.c.bf16 %v156_v61, %v154_v60  ;;  %v277_v14 = vld [vmem:[%s2962_s2 + $0xf0] sm:$0xff]  ;;  %v262_v18 = vld [vmem:[%s2962_s2 + $0x78] sm:$0xff]  ;;  %v358_v28 = vld [vmem:[%s2963_s3] sm:$0xff] }
  0x6a   :  { %1959 = vmatprep.subr.bf16.mxu0 %v1958_v5  ;;  %v165_v5 = vld [vmem:[%s2961_s1 + $0x1f8] sm:$0xff]  ;;  %v2018_v16 = vpack.c.bf16 %v278_v15, %v277_v14  ;;  %v360_v31 = vld [vmem:[%s2963_s3 + $0x10] sm:$0xff] }
  0x6b   :  { %v1986_v7 = vpack.c.bf16 %v165_v5, %v163_v4  ;;  %v361_v32 = vld [vmem:[%s2963_s3 + $0x18] sm:$0xff] }
  0x6c   :  { %2013 = vmatpush3.bf16.msra.mxu1 %v2012_v47  ;;  %v2026_v33 = vpack.c.bf16 %v361_v32, %v360_v31 }
  0x6d   :  { %1961 = vmatpush1.bf16.msra.mxu0 %v1960_v12  ;;  %2015 = vmatprep.subr.bf16.mxu1 %v2014_v49  ;;  %v101_v12 = vld [vmem:[%s2960_s0 + $0x18] sm:$0xff] }
  0x6e   :  { %1963 = vmatprep.subr.bf16.mxu0 %v1962_v17  ;;  %v261_v17 = vld [vmem:[%s2962_s2 + $0x70] sm:$0xff] }
  0x6f   :  { %v2020_v19 = vpack.c.bf16 %v262_v18, %v261_v17  ;;  %v510_v17 = vld [vmem:[#allocation3] sm:$0xff] }
  0x70   :  { %2017 = vmatpush3.bf16.msra.mxu1 %v2016_v57 }
  0x71   :  { %1965 = vmatpush1.bf16.msra.mxu0 %v1964_v24  ;;  %2019 = vmatprep.subr.bf16.mxu1 %v2018_v16 }
  0x72   :  { %1967 = vmatprep.subr.bf16.mxu0 %v1966_v29  ;;  %v359_v29 = vld [vmem:[%s2963_s3 + $0x8] sm:$0xff] }
  0x73   :  { %v2022_v30 = vpack.c.bf16 %v359_v29, %v358_v28 }
  0x74   :  { %2021 = vmatpush3.bf16.msra.mxu1 %v2020_v19 }
  0x75   :  { %1969 = vmatpush1.bf16.msra.mxu0 %v1968_v36  ;;  %2023 = vmatprep.subr.bf16.mxu1 %v2022_v30 }
  0x76   :  { %1971 = vmatprep.subr.bf16.mxu0 %v1970_v41 }
  0x79   :  { %1973 = vmatpush1.bf16.msra.mxu0 %v1972_v48 }
  0x7a   :  { %1975 = vmatprep.subr.bf16.mxu0 %v1974_v52 }
  0x7d   :  { %1977 = vmatpush1.bf16.msra.mxu0 %v1976_v58 }
  0x7e   :  { %1979 = vmatprep.subr.bf16.mxu0 %v1978_v59 }
  0x81   :  { %1981 = vmatpush1.bf16.msra.mxu0 %v1980_v0 }
  0x82   :  { %1983 = vmatprep.subr.bf16.mxu0 %v1982_v1 }
  0x85   :  { %1985 = vmatpush1.bf16.msra.mxu0 %v1984_v6 }
  0x86   :  { %1987 = vmatprep.subr.bf16.mxu0 %v1986_v7 }
  0x89   :  { %1989 = vmatpush1.bf16.msra.mxu0 %v1988_v10 }
  0x8c   :  { %231 = vmatmul.mubr.f32.vlgmr.msra.gmra.mrb[0].mxu0 %v98_v11 }
  0x8d   :  { %236 = vmatprep.mubr.f32.mxu0 %v101_v12 }
  0x90   :  { %237 = vmatmul.mubr.f32.gmra.mrb[2].mxu0 %v100_v13 }
 0x15f   :  { %v232_v20 = vpop.f32.mrb[0].mxu0 }
 0x160   :  { %v234_v21 = vpop.f32.mrb[1].mxu0  ;;  %v243_v23 = vmul.f32 %v232_v20, %v232_v20 }
 0x161   :  { %v244_v22 = vmul.f32 %v234_v21, %v234_v21 }
 0x163   :  { %v238_v24 = vpop.f32.mrb[2].mxu0  ;;  %343 = vmatprep.mubr.f32.mxu1 %v244_v22 }
 0x164   :  { %v240_v25 = vpop.f32.mrb[3].mxu0  ;;  %344 = vmatmul.mubr.f32.vlgmr.msra.gmra.mrb[0].mxu1 %v243_v23  ;;  %v245_v27 = vmul.f32 %v238_v24, %v238_v24 }
 0x165   :  { %v246_v26 = vmul.f32 %v240_v25, %v240_v25  ;;  %2025 = vmatpush3.bf16.msra.mxu1 %v2022_v30 }
 0x166   :  { %2027 = vmatprep.subr.bf16.mxu1 %v2026_v33 }
 0x167   :  { %348 = vmatprep.mubr.f32.mxu1 %v246_v26 }
 0x168   :  { %349 = vmatmul.mubr.f32.gmra.mrb[2].mxu1 %v245_v27 }
 0x169   :  { %2029 = vmatpush3.bf16.msra.mxu1 %v2026_v33  ;;  %v444_v33 = vld [vmem:[%s2965_s5] sm:$0xff] }
 0x237   :  { %v1736_v34 = vpop.f32.mrb[0].mxu1 }
 0x238   :  { %v1737_v35 = vpop.f32.mrb[1].mxu1 }
 0x239   :  { %v1738_v36 = vadd.f32 %v1737_v35, %v1736_v34 }
 0x23b   :  { %v346_v37 = vadd.f32 1e-06, %v1738_v36  ;;  %v1739_v38 = vpop.f32.mrb[2].mxu1 }
 0x23c   :  { %v1740_v39 = vpop.f32.mrb[3].mxu1 }
 0x23d   :  { %2114 = vlog2.f32 %v346_v37  ;;  %v1741_v40 = vadd.f32 %v1740_v39, %v1739_v38  ;;  %v445_v37 = vld [vmem:[#allocation6] sm:$0xff]  ;;  %v593_v39 = vld [vmem:[#allocation8] sm:$0xff] }
 0x23f   :  { %v351_v41 = vadd.f32 1e-06, %v1741_v40  ;;  %v594_v40 = vld [vmem:[#allocation8 + $0x8] sm:$0xff] }
 0x241   :  { %2116 = vlog2.f32 %v351_v41 }
 0x247   :  { %v2115_v42 = vpop.eup %2114 }
 0x248   :  { %v355_v43 = vmul.f32 0.6931472, %v2115_v42 }
 0x24a   :  { %1810 = vmatprep.mubr.msk.f32.mxu1 %vm362_vm0, %v355_v43 }
 0x24b   :  { %v2117_v44 = vpop.eup %2116 }
 0x24c   :  { %v357_v45 = vmul.f32 0.6931472, %v2117_v44  ;;  %v2034_v44 = vpack.c.bf16 %v594_v40, %v593_v39 }
 0x24e   :  { %1811 = vmatmul.mubr.msk.f32.vlgmr.msra.gmra.mrb[4].mxu1 %vm362_vm0, %v357_v45  ;;  %v511_v45 = vld [vmem:[#allocation3 + $0x8] sm:$0xff] }
 0x24f   :  { %1817 = vmatprep.mubr.msk.f32.mxu1 %vm446_vm1, %v510_v17 }
 0x321   :  { %v1812_v46 = vpop.f32.mrb[4].mxu1 }
 0x322   :  { %v435_v47 = vpop.f32.mrb[5].mxu1  ;;  %v479_v48 = vsel %vm446_vm1, %v1812_v46, 0.0 }
 0x323   :  { %480 = vadd.xlane.f32.xlu1 %v479_v48  ;;  %v447_v49 = vsel %vm446_vm1, %v435_v47, 0.0 }
 0x324   :  { %448 = vadd.xlane.f32.xlu0 %v447_v49  ;;  %v2294_v49 = vmov 0.0|0.0  }
 0x325   :  { %2050 = vmatprep.subr.bf16.mxu0 %v2294_v49 }
 0x3b0   :  { %v481_v62 = vpop.xlane.xlu1 %480 }
 0x3b1   :  { %v449_v50 = vpop.xlane.xlu0 %448  ;;  %v482_v63 = vrot.slane %v481_v62, 4 }
 0x3b2   :  { %v450_v51 = vrot.slane %v449_v50, 4 }
 0x3b3   :  { %v483_v0 = vadd.f32 %v482_v63, %v481_v62 }
 0x3b4   :  { %v451_v52 = vadd.f32 %v450_v51, %v449_v50  ;;  %v685_v50 = vld [vmem:[#allocation9 + $0x10] sm:$0xff]  ;;  %v686_v51 = vld [vmem:[#allocation9 + $0x18] sm:$0xff] }
 0x3b5   :  { %v484_v1 = vrot.slane %v483_v0, 2 }
 0x3b6   :  { %v452_v53 = vrot.slane %v451_v52, 2 }
 0x3b7   :  { %v485_v5 = vadd.f32 %v484_v1, %v483_v0 }
 0x3b8   :  { %v453_v54 = vadd.f32 %v452_v53, %v451_v52  ;;  %v2770_v52 = vpack.c.bf16 %v686_v51, %v685_v50  ;;  %v2296_v53 = vmov 0.0  }
 0x3b9   :  { %v486_v8 = vrot.slane %v485_v5, 1  ;;  %1857 = vmatprep.mubr.msk.f32.mxu0 %vm2295_vm2, %v2296_v53 }
 0x3ba   :  { %v454_v55 = vrot.slane %v453_v54, 1 }
 0x3bb   :  { %v487_v11 = vadd.f32 %v486_v8, %v485_v5 }
 0x3bc   :  { %v455_v56 = vadd.f32 %v454_v55, %v453_v54 }
 0x3be   :  { %2094 = vpush %v455_v56  ;;  %v1682_v56 = vld [vmem:[%s2969_s9] ss:$0 sm:$0xff]  ;;  %s2298_s9 = smov 96  }
 0x3ef   :  { %s2095_s3 = spop %2094 }
 0x3f0   :  { %v457_v57 = vstv %s2095_s3 }
 0x3f1   :  { %v459_v58 = vmul.f32 0.0078125, %v457_v57 }
 0x3f3   :  { %v460_v59 = vsub.f32 %v435_v47, %v459_v58  ;;  %v684_v47 = vld [vmem:[#allocation9 + $0x8] sm:$0xff] }
 0x3f5   :  { %v461_v60 = vmul.f32 %v460_v59, %v460_v59 }
 0x3f7   :  { %v462_v61 = vsel %vm446_vm1, %v461_v60, 0.0  ;;  %v2799_v60 = vld [vmem:[%s2970_s10] ss:$0 sm:$0xff] }
 0x3f8   :  { %463 = vadd.xlane.f32.xlu0 %v462_v61 }
 0x485   :  { %v464_v2 = vpop.xlane.xlu0 %463 }
 0x486   :  { %v465_v3 = vrot.slane %v464_v2, 4 }
 0x488   :  { %v466_v4 = vadd.f32 %v465_v3, %v464_v2 }
 0x48a   :  { %v467_v6 = vrot.slane %v466_v4, 2 }
 0x48c   :  { %v468_v7 = vadd.f32 %v467_v6, %v466_v4 }
 0x48e   :  { %v469_v9 = vrot.slane %v468_v7, 1 }
 0x490   :  { %v470_v10 = vadd.f32 %v469_v9, %v468_v7 }
 0x492   :  { %2096 = vpush %v470_v10 }
 0x493   :  { %2098 = vpush %v487_v11 }
 0x4c3   :  { %s2097_s22 = spop %2096 }
 0x4c4   :  { %s2099_s23 = spop %2098  ;;  %v472_v25 = vstv %s2097_s22 }
 0x4c5   :  { %v489_v12 = vstv %s2099_s23  ;;  %v473_v26 = vmul.f32 0.0078125, %v472_v25 }
 0x4c6   :  { %v490_v13 = vmul.f32 0.0078125, %v489_v12 }
 0x4c7   :  { %v474_v27 = vadd.f32 1e-05, %v473_v26 }
 0x4c8   :  { %v491_v14 = vsub.f32 %v1812_v46, %v490_v13  ;;  %v683_v46 = vld [vmem:[#allocation9] sm:$0xff] }
 0x4c9   :  { %2118 = vrsqrt.f32 %v474_v27  ;;  %v2764_v48 = vpack.c.bf16 %v684_v47, %v683_v46 }
 0x4ca   :  { %v492_v15 = vmul.f32 %v491_v14, %v491_v14 }
 0x4cb   :  { %2052 = vmatpush3.bf16.msra.mxu0 %v2764_v48 }
 0x4cc   :  { %v493_v16 = vsel %vm446_vm1, %v492_v15, 0.0  ;;  %2053 = vmatprep.subr.bf16.mxu0 %v2294_v49 }
 0x4cd   :  { %494 = vadd.xlane.f32.xlu1 %v493_v16 }
 0x4cf   :  { %2055 = vmatpush3.bf16.msra.mxu0 %v2770_v52 }
 0x4d0   :  { %2062 = vmatprep.subr.bf16.mxu0 %v2294_v49 }
 0x4d3   :  { %v2119_v31 = vpop.eup %2118 }
 0x4d4   :  { %v476_v32 = vmul.f32 %v2119_v31, %v460_v59 }
 0x4d6   :  { %v477_v35 = vmul.f32 %v476_v32, %v444_v33 }
 0x4d8   :  { %v478_v41 = vadd.f32 %v477_v35, %v445_v37 }
 0x55a   :  { %v495_v18 = vpop.xlane.xlu1 %494 }
 0x55b   :  { %v496_v19 = vrot.slane %v495_v18, 4 }
 0x55d   :  { %v497_v20 = vadd.f32 %v496_v19, %v495_v18 }
 0x55f   :  { %v498_v21 = vrot.slane %v497_v20, 2 }
 0x561   :  { %v499_v22 = vadd.f32 %v498_v21, %v497_v20 }
 0x563   :  { %v500_v23 = vrot.slane %v499_v22, 1 }
 0x565   :  { %v501_v24 = vadd.f32 %v500_v23, %v499_v22 }
 0x567   :  { %2100 = vpush %v501_v24 }
 0x598   :  { %s2101_s7 = spop %2100 }
 0x599   :  { %v503_v28 = vstv %s2101_s7 }
 0x59a   :  { %v504_v29 = vmul.f32 0.0078125, %v503_v28 }
 0x59c   :  { %v505_v30 = vadd.f32 1e-05, %v504_v29 }
 0x59e   :  { %2120 = vrsqrt.f32 %v505_v30 }
 0x5a8   :  { %v2121_v34 = vpop.eup %2120 }
 0x5a9   :  { %v507_v36 = vmul.f32 %v2121_v34, %v491_v14 }
 0x5ab   :  { %v508_v38 = vmul.f32 %v507_v36, %v444_v33 }
 0x5ad   :  { %v509_v42 = vadd.f32 %v508_v38, %v445_v37 }
 0x5af   :  { %v2030_v43 = vpack.c.bf16 %v509_v42, %v478_v41 }
 0x5b1   :  { %2031 = vmatprep.subr.bf16.mxu1 %v2030_v43 }
 0x5b2   :  { %2033 = vmatpush3.bf16.msra.mxu1 %v2030_v43 }
 0x5b3   :  { %2035 = vmatprep.subr.bf16.mxu1 %v2034_v44 }
 0x5b5   :  { %1818 = vmatmul.mubr.msk.f32.vlgmr.msra.gmra.mrb[6].mxu1 %vm446_vm1, %v511_v45 }
 0x5b6   :  { %2037 = vmatpush3.bf16.msra.mxu1 %v2034_v44 }
 0x5b7   :  { %2038 = vmatprep.subr.bf16.mxu1 %v2294_v49 }
 0x688   :  { %v1819_v54 = vpop.f32.mrb[6].mxu1 }
 0x689   :  { %v584_v55 = vpop.f32.mrb[7].mxu1 }
 0x68a   :  { %1824 = vmatprep.mubr.msk.f32.mxu1 %vm446_vm1, %v584_v55 }
 0x68b   :  { %1825 = vmatmul.mubr.msk.f32.vlgmr.msra.gmra.mrb[8].mxu1 %vm446_vm1, %v1819_v54 }
 0x68c   :  { %2040 = vmatpush3.bf16.msra.mxu1 %v2764_v48  ;;  %1835 = vmatprep.mubr.msk.f32.mxu1 %vm2295_vm2, %v2296_v53 }
 0x68d   :  { %2041 = vmatprep.subr.bf16.mxu1 %v2294_v49 }
 0x690   :  { %2043 = vmatpush3.bf16.msra.mxu1 %v2770_v52 }
 0x691   :  { %2044 = vmatprep.subr.bf16.mxu1 %v2294_v49 }
 0x693   :  { %1836 = vmatmul.mubr.f32.vlgmr.msra.gmra.mrb[10].mxu1 %v2296_v53 }
 0x694   :  { %2046 = vmatpush3.bf16.msra.mxu1 %v2764_v48  ;;  %1846 = vmatprep.mubr.msk.f32.mxu1 %vm2295_vm2, %v2296_v53 }
 0x695   :  { %2047 = vmatprep.subr.bf16.mxu1 %v2294_v49 }
 0x698   :  { %2049 = vmatpush3.bf16.msra.mxu1 %v2770_v52 }
 0x699   :  { %2056 = vmatprep.subr.bf16.mxu1 %v2294_v49 }
 0x75e   :  { %v1826_v57 = vpop.f32.mrb[8].mxu1 }
 0x75f   :  { %v2794_v58 = vadd.f32 %v1826_v57, %v1682_v56  ;;  %v674_v59 = vpop.f32.mrb[9].mxu1 }
 0x760   :  { %v2803_v0 = vadd.f32 %v1682_v56, %v674_v59 }
 0x766   :  { %v763_v61 = vpop.f32.mrb[10].mxu1 }
 0x767   :  { %v764_v62 = vadd.f32 %v2799_v60, %v763_v61  ;;  %v1837_v63 = vpop.f32.mrb[11].mxu1 }
 0x769   :  { %775 = vrot.lane.b32.xlu0 %v764_v62, %s2297_s29  ;;  %v767_v1 = vadd.f32 %v764_v62, %v2803_v0 }
 0x76b   :  { %v1686_v2 = vmul.f32 -1.442695, %v767_v1 }
 0x76d   :  { %2122 = vpow2.f32 %v1686_v2 }
 0x777   :  { %v2123_v3 = vpop.eup %2122 }
 0x778   :  { %v771_v4 = vadd.f32 1.0, %v2123_v3 }
 0x77a   :  { %2124 = vrcp.f32 %v771_v4 }
 0x784   :  { %v2125_v5 = vpop.eup %2124 }
 0x785   :  { %v785_v11 = vsub.f32 1.0, %v2125_v5  ;;  %v791_v13 = vmul.f32 0.0, %v2125_v5 }
 0x7db   :  { %v776_v6 = vpop.permute.xlu0 %775 }
 0x7dc   :  { %v778_v7 = vmul.f32 %v2125_v5, %v776_v6 }
 0x7de   :  { %780 = vrot.lane.b32.xlu1 %v778_v7, %s2297_s29 }
 0x850   :  { %v781_v8 = vpop.permute.xlu1 %780 }
 0x851   :  { %v783_v9 = vadd.f32 %v781_v8, %v2803_v0 }
 0x853   :  { %2126 = vtanh.f32 %v783_v9 }
 0x85d   :  { %v2127_v10 = vpop.eup %2126 }
 0x85e   :  { %787 = vrot.lane.b32.xlu1 %v2127_v10, %s2298_s9 }
 0x8d0   :  { %v788_v12 = vpop.permute.xlu1 %787 }
 0x8d1   :  { %v790_v14 = vmul.f32 %v788_v12, %v785_v11 }
 0x8d3   :  { %v792_v15 = vadd.f32 %v791_v13, %v790_v14 }
 0x8d5   :  { %794 = vrot.lane.b32.xlu1 %v792_v15, %s2298_s9  ;;  %v897_v31 = vrot.slane %v792_v15, 6 }
 0x947   :  { %v795_v16 = vpop.permute.xlu1 %794 }
 0x948   :  { %798 = vst.msk [vmem:[#allocation2] sm:$0x3] %vm797_vm3, %v795_v16  ;;  %1847 = vmatmul.mubr.msk.f32.vlgmr.msra.gmra.mrb[12].mxu1 %vm362_vm0, %v795_v16 }
 0x949   :  { %2058 = vmatpush3.bf16.msra.mxu1 %v2764_v48  ;;  %1868 = vmatprep.mubr.msk.f32.mxu1 %vm2295_vm2, %v2296_v53 }
 0x94a   :  { %2059 = vmatprep.subr.bf16.mxu1 %v2294_v49 }
 0x94d   :  { %2061 = vmatpush3.bf16.msra.mxu1 %v2770_v52 }
 0x94e   :  { %2068 = vmatprep.subr.bf16.mxu1 %v2294_v49 }
 0xa1b   :  { %v867_v17 = vpop.f32.mrb[12].mxu1 }
 0xa1c   :  { %v868_v18 = vadd.f32 %v2799_v60, %v867_v17  ;;  %v1848_v19 = vpop.f32.mrb[13].mxu1 }
 0xa1e   :  { %v872_v20 = vrot.slane %v868_v18, 6 }
 0xa20   :  { %881 = vrot.lane.b32.xlu0 %v872_v20, %s2297_s29  ;;  %v874_v21 = vadd.f32 %v872_v20, %v2803_v0 }
 0xa22   :  { %v1688_v22 = vmul.f32 -1.442695, %v874_v21 }
 0xa24   :  { %2128 = vpow2.f32 %v1688_v22 }
 0xa2e   :  { %v2129_v23 = vpop.eup %2128 }
 0xa2f   :  { %v878_v24 = vadd.f32 1.0, %v2129_v23 }
 0xa31   :  { %2130 = vrcp.f32 %v878_v24 }
 0xa3b   :  { %v2131_v25 = vpop.eup %2130 }
 0xa3c   :  { %v891_v32 = vsub.f32 1.0, %v2131_v25  ;;  %v899_v35 = vmul.f32 %v2131_v25, %v897_v31 }
 0xa92   :  { %v882_v26 = vpop.permute.xlu0 %881 }
 0xa93   :  { %v884_v27 = vmul.f32 %v2131_v25, %v882_v26 }
 0xa95   :  { %886 = vrot.lane.b32.xlu1 %v884_v27, %s2297_s29 }
 0xb07   :  { %v887_v28 = vpop.permute.xlu1 %886 }
 0xb08   :  { %v889_v29 = vadd.f32 %v887_v28, %v2803_v0 }
 0xb0a   :  { %2132 = vtanh.f32 %v889_v29 }
 0xb14   :  { %v2133_v30 = vpop.eup %2132 }
 0xb15   :  { %893 = vrot.lane.b32.xlu0 %v2133_v30, %s2298_s9 }
 0xb87   :  { %v894_v33 = vpop.permute.xlu0 %893 }
 0xb88   :  { %v896_v34 = vmul.f32 %v894_v33, %v891_v32 }
 0xb8a   :  { %v2824_v36 = vadd.f32 %v899_v35, %v896_v34 }
 0xb8c   :  { %v907_v37 = vrot.slane %v2824_v36, 2  ;;  %v1008_v59 = vrot.slane %v2824_v36, 6 }
 0xb8e   :  { %908 = vrot.lane.b32.xlu1 %v907_v37, %s2298_s9 }
 0xc00   :  { %v909_v38 = vpop.permute.xlu1 %908 }
 0xc01   :  { %1858 = vmatmul.mubr.msk.f32.vlgmr.msra.gmra.mrb[4].mxu0 %vm362_vm0, %v909_v38 }
 0xc02   :  { %2064 = vmatpush3.bf16.msra.mxu0 %v2764_v48  ;;  %1879 = vmatprep.mubr.msk.f32.mxu0 %vm2295_vm2, %v2296_v53 }
 0xc03   :  { %2065 = vmatprep.subr.bf16.mxu0 %v2294_v49 }
 0xc06   :  { %2067 = vmatpush3.bf16.msra.mxu0 %v2770_v52 }
 0xc07   :  { %2074 = vmatprep.subr.bf16.mxu0 %v2294_v49 }
 0xcd4   :  { %v978_v39 = vpop.f32.mrb[4].mxu0 }
 0xcd5   :  { %v979_v40 = vadd.f32 %v2799_v60, %v978_v39  ;;  %v1859_v41 = vpop.f32.mrb[5].mxu0 }
 0xcd7   :  { %v983_v42 = vrot.slane %v979_v40, 4 }
 0xcd9   :  { %992 = vrot.lane.b32.xlu0 %v983_v42, %s2297_s29  ;;  %v985_v43 = vadd.f32 %v983_v42, %v2803_v0 }
 0xcdb   :  { %v1690_v44 = vmul.f32 -1.442695, %v985_v43 }
 0xcdd   :  { %2134 = vpow2.f32 %v1690_v44 }
 0xce7   :  { %v2135_v45 = vpop.eup %2134 }
 0xce8   :  { %v989_v46 = vadd.f32 1.0, %v2135_v45 }
 0xcea   :  { %2136 = vrcp.f32 %v989_v46 }
 0xcf4   :  { %v2137_v47 = vpop.eup %2136 }
 0xcf5   :  { %v1002_v57 = vsub.f32 1.0, %v2137_v47  ;;  %v1010_v62 = vmul.f32 %v2137_v47, %v1008_v59 }
 0xd4b   :  { %v993_v50 = vpop.permute.xlu0 %992 }
 0xd4c   :  { %v995_v51 = vmul.f32 %v2137_v47, %v993_v50 }
 0xd4e   :  { %997 = vrot.lane.b32.xlu1 %v995_v51, %s2297_s29 }
 0xdc0   :  { %v998_v54 = vpop.permute.xlu1 %997 }
 0xdc1   :  { %v1000_v55 = vadd.f32 %v998_v54, %v2803_v0 }
 0xdc3   :  { %2138 = vtanh.f32 %v1000_v55 }
 0xdcd   :  { %v2139_v56 = vpop.eup %2138 }
 0xdce   :  { %1004 = vrot.lane.b32.xlu0 %v2139_v56, %s2298_s9 }
 0xe40   :  { %v1005_v61 = vpop.permute.xlu0 %1004 }
 0xe41   :  { %v1007_v63 = vmul.f32 %v1005_v61, %v1002_v57 }
 0xe43   :  { %v2842_v1 = vadd.f32 %v1010_v62, %v1007_v63 }
 0xe45   :  { %v1018_v2 = vrot.slane %v2842_v1, 4  ;;  %v1119_v19 = vrot.slane %v2842_v1, 6 }
 0xe47   :  { %1019 = vrot.lane.b32.xlu1 %v1018_v2, %s2298_s9 }
 0xeb9   :  { %v1020_v3 = vpop.permute.xlu1 %1019 }
 0xeba   :  { %1869 = vmatmul.mubr.msk.f32.vlgmr.msra.gmra.mrb[14].mxu1 %vm362_vm0, %v1020_v3 }
 0xebb   :  { %2070 = vmatpush3.bf16.msra.mxu1 %v2764_v48  ;;  %1890 = vmatprep.mubr.msk.f32.mxu1 %vm2295_vm2, %v2296_v53 }
 0xebc   :  { %2071 = vmatprep.subr.bf16.mxu1 %v2294_v49 }
 0xebf   :  { %2073 = vmatpush3.bf16.msra.mxu1 %v2770_v52 }
 0xec0   :  { %2080 = vmatprep.subr.bf16.mxu1 %v2294_v49 }
 0xf8d   :  { %v1089_v4 = vpop.f32.mrb[14].mxu1 }
 0xf8e   :  { %v1090_v5 = vadd.f32 %v2799_v60, %v1089_v4  ;;  %v1870_v6 = vpop.f32.mrb[15].mxu1 }
 0xf90   :  { %v1094_v7 = vrot.slane %v1090_v5, 2 }
 0xf92   :  { %1103 = vrot.lane.b32.xlu0 %v1094_v7, %s2297_s29  ;;  %v1096_v8 = vadd.f32 %v1094_v7, %v2803_v0 }
 0xf94   :  { %v1692_v9 = vmul.f32 -1.442695, %v1096_v8 }
 0xf96   :  { %2140 = vpow2.f32 %v1692_v9 }
 0xfa0   :  { %v2141_v10 = vpop.eup %2140 }
 0xfa1   :  { %v1100_v11 = vadd.f32 1.0, %v2141_v10 }
 0xfa3   :  { %2142 = vrcp.f32 %v1100_v11 }
 0xfad   :  { %v2143_v12 = vpop.eup %2142 }
 0xfae   :  { %v1113_v18 = vsub.f32 1.0, %v2143_v12  ;;  %v1121_v21 = vmul.f32 %v2143_v12, %v1119_v19 }
0x1004   :  { %v1104_v13 = vpop.permute.xlu0 %1103 }
0x1005   :  { %v1106_v14 = vmul.f32 %v2143_v12, %v1104_v13 }
0x1007   :  { %1108 = vrot.lane.b32.xlu1 %v1106_v14, %s2297_s29 }
0x1079   :  { %v1109_v15 = vpop.permute.xlu1 %1108 }
0x107a   :  { %v1111_v16 = vadd.f32 %v1109_v15, %v2803_v0 }
0x107c   :  { %2144 = vtanh.f32 %v1111_v16 }
0x1086   :  { %v2145_v17 = vpop.eup %2144 }
0x1087   :  { %1115 = vrot.lane.b32.xlu0 %v2145_v17, %s2298_s9 }
0x10f9   :  { %v1116_v20 = vpop.permute.xlu0 %1115 }
0x10fa   :  { %v1118_v22 = vmul.f32 %v1116_v20, %v1113_v18 }
0x10fc   :  { %v2860_v23 = vadd.f32 %v1121_v21, %v1118_v22 }
0x10fe   :  { %v1129_v24 = vrot.slane %v2860_v23, 6 }
0x1100   :  { %1130 = vrot.lane.b32.xlu1 %v1129_v24, %s2298_s9 }
0x1172   :  { %v1131_v25 = vpop.permute.xlu1 %1130 }
0x1173   :  { %1880 = vmatmul.mubr.msk.f32.vlgmr.msra.gmra.mrb[6].mxu0 %vm362_vm0, %v1131_v25 }
0x1174   :  { %2076 = vmatpush3.bf16.msra.mxu0 %v2764_v48  ;;  %1901 = vmatprep.mubr.msk.f32.mxu0 %vm2295_vm2, %v2296_v53 }
0x1175   :  { %2077 = vmatprep.subr.bf16.mxu0 %v2294_v49 }
0x1178   :  { %2079 = vmatpush3.bf16.msra.mxu0 %v2770_v52 }
0x1246   :  { %v1200_v0 = vpop.f32.mrb[6].mxu0 }
0x1247   :  { %v1201_v26 = vadd.f32 %v2799_v60, %v1200_v0  ;;  %v1881_v27 = vpop.f32.mrb[7].mxu0 }
0x1249   :  { %1212 = vrot.lane.b32.xlu0 %v1201_v26, %s2297_s29  ;;  %v1204_v28 = vadd.f32 %v1201_v26, %v2794_v58 }
0x124b   :  { %v1694_v29 = vmul.f32 -1.442695, %v1204_v28 }
0x124d   :  { %2146 = vpow2.f32 %v1694_v29 }
0x1257   :  { %v2147_v30 = vpop.eup %2146 }
0x1258   :  { %v1208_v31 = vadd.f32 1.0, %v2147_v30 }
0x125a   :  { %2148 = vrcp.f32 %v1208_v31 }
0x1264   :  { %v2149_v32 = vpop.eup %2148 }
0x1265   :  { %v1222_v39 = vsub.f32 1.0, %v2149_v32  ;;  %v1229_v41 = vmul.f32 %v2149_v32, %v1129_v24 }
0x12bb   :  { %v1213_v33 = vpop.permute.xlu0 %1212 }
0x12bc   :  { %v1215_v34 = vmul.f32 %v2149_v32, %v1213_v33 }
0x12be   :  { %1217 = vrot.lane.b32.xlu1 %v1215_v34, %s2297_s29 }
0x1330   :  { %v1218_v35 = vpop.permute.xlu1 %1217 }
0x1331   :  { %v1220_v37 = vadd.f32 %v1218_v35, %v2794_v58 }
0x1333   :  { %2150 = vtanh.f32 %v1220_v37 }
0x133d   :  { %v2151_v38 = vpop.eup %2150 }
0x133e   :  { %1224 = vrot.lane.b32.xlu0 %v2151_v38, %s2298_s9 }
0x13b0   :  { %v1225_v40 = vpop.permute.xlu0 %1224 }
0x13b1   :  { %v1227_v42 = vmul.f32 %v1225_v40, %v1222_v39 }
0x13b3   :  { %v1230_v43 = vadd.f32 %v1229_v41, %v1227_v42 }
0x13b5   :  { %1232 = vrot.lane.b32.xlu1 %v1230_v43, %s2298_s9  ;;  %v1334_v61 = vrot.slane %v1230_v43, 6 }
0x1427   :  { %v1233_v44 = vpop.permute.xlu1 %1232 }
0x1428   :  { %1235 = vst.msk [vmem:[#allocation2 + $0x8] sm:$0x3] %vm797_vm3, %v1233_v44  ;;  %1891 = vmatmul.mubr.msk.f32.vlgmr.msra.gmra.mrb[16].mxu1 %vm362_vm0, %v1233_v44 }
0x1429   :  { %2082 = vmatpush3.bf16.msra.mxu1 %v2764_v48  ;;  %1912 = vmatprep.mubr.msk.f32.mxu1 %vm2295_vm2, %v2296_v53 }
0x142a   :  { %2083 = vmatprep.subr.bf16.mxu1 %v2294_v49 }
0x142d   :  { %2085 = vmatpush3.bf16.msra.mxu1 %v2770_v52 }
0x14fb   :  { %v1304_v45 = vpop.f32.mrb[16].mxu1 }
0x14fc   :  { %v1305_v46 = vadd.f32 %v2799_v60, %v1304_v45  ;;  %v1892_v47 = vpop.f32.mrb[17].mxu1 }
0x14fe   :  { %v1309_v50 = vrot.slane %v1305_v46, 6  ;;  %v1567_v46 = vld [vmem:[%s2971_s11 + $0x10] sm:$0xff] }
0x1500   :  { %1318 = vrot.lane.b32.xlu0 %v1309_v50, %s2297_s29  ;;  %v1311_v51 = vadd.f32 %v1309_v50, %v2794_v58 }
0x1502   :  { %v1696_v54 = vmul.f32 -1.442695, %v1311_v51 }
0x1504   :  { %2152 = vpow2.f32 %v1696_v54 }
0x150e   :  { %v2153_v55 = vpop.eup %2152 }
0x150f   :  { %v1315_v48 = vadd.f32 1.0, %v2153_v55 }
0x1511   :  { %2154 = vrcp.f32 %v1315_v48 }
0x151b   :  { %v2155_v56 = vpop.eup %2154 }
0x151c   :  { %v1328_v62 = vsub.f32 1.0, %v2155_v56  ;;  %v1336_v3 = vmul.f32 %v2155_v56, %v1334_v61  ;;  %v1701_v61 = vld [vmem:[%s2972_s12] ss:$0 sm:$0xff] }
0x1572   :  { %v1319_v53 = vpop.permute.xlu0 %1318 }
0x1573   :  { %v1321_v57 = vmul.f32 %v2155_v56, %v1319_v53 }
0x1575   :  { %1323 = vrot.lane.b32.xlu1 %v1321_v57, %s2297_s29 }
0x15e7   :  { %v1324_v49 = vpop.permute.xlu1 %1323 }
0x15e8   :  { %v1326_v52 = vadd.f32 %v1324_v49, %v2794_v58 }
0x15ea   :  { %2156 = vtanh.f32 %v1326_v52 }
0x15f4   :  { %v2157_v59 = vpop.eup %2156 }
0x15f5   :  { %1330 = vrot.lane.b32.xlu0 %v2157_v59, %s2298_s9 }
0x1667   :  { %v1331_v63 = vpop.permute.xlu0 %1330 }
0x1668   :  { %v1333_v2 = vmul.f32 %v1331_v63, %v1328_v62 }
0x166a   :  { %v2890_v4 = vadd.f32 %v1336_v3, %v1333_v2 }
0x166c   :  { %v1343_v5 = vrot.slane %v2890_v4, 2  ;;  %v1444_v22 = vrot.slane %v2890_v4, 6 }
0x166e   :  { %1344 = vrot.lane.b32.xlu1 %v1343_v5, %s2298_s9 }
0x16e0   :  { %v1345_v6 = vpop.permute.xlu1 %1344 }
0x16e1   :  { %1902 = vmatmul.mubr.msk.f32.vlgmr.msra.gmra.mrb[8].mxu0 %vm362_vm0, %v1345_v6 }
0x17b4   :  { %v1414_v7 = vpop.f32.mrb[8].mxu0 }
0x17b5   :  { %v1415_v8 = vadd.f32 %v2799_v60, %v1414_v7  ;;  %v1903_v9 = vpop.f32.mrb[9].mxu0 }
0x17b7   :  { %v1419_v10 = vrot.slane %v1415_v8, 4 }
0x17b9   :  { %1428 = vrot.lane.b32.xlu0 %v1419_v10, %s2297_s29  ;;  %v1421_v11 = vadd.f32 %v1419_v10, %v2794_v58 }
0x17bb   :  { %v1698_v12 = vmul.f32 -1.442695, %v1421_v11 }
0x17bd   :  { %2158 = vpow2.f32 %v1698_v12 }
0x17c7   :  { %v2159_v13 = vpop.eup %2158 }
0x17c8   :  { %v1425_v14 = vadd.f32 1.0, %v2159_v13 }
0x17ca   :  { %2160 = vrcp.f32 %v1425_v14 }
0x17d4   :  { %v2161_v15 = vpop.eup %2160 }
0x17d5   :  { %v1438_v21 = vsub.f32 1.0, %v2161_v15  ;;  %v1446_v25 = vmul.f32 %v2161_v15, %v1444_v22 }
0x182b   :  { %v1429_v16 = vpop.permute.xlu0 %1428 }
0x182c   :  { %v1431_v17 = vmul.f32 %v2161_v15, %v1429_v16 }
0x182e   :  { %1433 = vrot.lane.b32.xlu1 %v1431_v17, %s2297_s29 }
0x18a0   :  { %v1434_v18 = vpop.permute.xlu1 %1433 }
0x18a1   :  { %v1436_v19 = vadd.f32 %v1434_v18, %v2794_v58 }
0x18a3   :  { %2162 = vtanh.f32 %v1436_v19 }
0x18ad   :  { %v2163_v20 = vpop.eup %2162 }
0x18ae   :  { %1440 = vrot.lane.b32.xlu0 %v2163_v20, %s2298_s9 }
0x1920   :  { %v1441_v24 = vpop.permute.xlu0 %1440 }
0x1921   :  { %v1443_v0 = vmul.f32 %v1441_v24, %v1438_v21 }
0x1923   :  { %v1447_v26 = vadd.f32 %v1446_v25, %v1443_v0 }
0x1925   :  { %v1453_v27 = vrot.slane %v1447_v26, 4  ;;  %v1554_v51 = vrot.slane %v1447_v26, 6 }
0x1927   :  { %1454 = vrot.lane.b32.xlu1 %v1453_v27, %s2298_s9 }
0x1999   :  { %v1455_v28 = vpop.permute.xlu1 %1454 }
0x199a   :  { %1913 = vmatmul.mubr.msk.f32.vlgmr.msra.gmra.mrb[18].mxu1 %vm362_vm0, %v1455_v28 }
0x1a6d   :  { %v1524_v29 = vpop.f32.mrb[18].mxu1 }
0x1a6e   :  { %v1525_v30 = vadd.f32 %v2799_v60, %v1524_v29  ;;  %v1914_v31 = vpop.f32.mrb[19].mxu1 }
0x1a70   :  { %v1529_v32 = vrot.slane %v1525_v30, 2 }
0x1a72   :  { %1538 = vrot.lane.b32.xlu0 %v1529_v32, %s2297_s29  ;;  %v1531_v33 = vadd.f32 %v1529_v32, %v2794_v58 }
0x1a74   :  { %v1700_v34 = vmul.f32 -1.442695, %v1531_v33 }
0x1a76   :  { %2164 = vpow2.f32 %v1700_v34 }
0x1a80   :  { %v2165_v35 = vpop.eup %2164 }
0x1a81   :  { %v1535_v37 = vadd.f32 1.0, %v2165_v35 }
0x1a83   :  { %2166 = vrcp.f32 %v1535_v37 }
0x1a8d   :  { %v2167_v38 = vpop.eup %2166 }
0x1a8e   :  { %v1548_v50 = vsub.f32 1.0, %v2167_v38  ;;  %v1556_v55 = vmul.f32 %v2167_v38, %v1554_v51 }
0x1ae4   :  { %v1539_v39 = vpop.permute.xlu0 %1538 }
0x1ae5   :  { %v1541_v40 = vmul.f32 %v2167_v38, %v1539_v39 }
0x1ae7   :  { %1543 = vrot.lane.b32.xlu1 %v1541_v40, %s2297_s29 }
0x1aeb   :  { %902 = vrot.lane.b32.xlu1 %v2824_v36, %s2298_s9 }
0x1aef   :  { %1124 = vrot.lane.b32.xlu1 %v2860_v23, %s2298_s9  ;;  %v1566_v23 = vld [vmem:[%s2971_s11 + $0x8] sm:$0xff] }
0x1af3   :  { %1449 = vrot.lane.b32.xlu1 %v1447_v26, %s2298_s9 }
0x1b59   :  { %v1544_v60 = vpop.permute.xlu1 %1543 }
0x1b5a   :  { %v1546_v41 = vadd.f32 %v1544_v60, %v2794_v58  ;;  %v1565_v58 = vld [vmem:[%s2971_s11] sm:$0xff] }
0x1b5b   :  { %v2086_v45 = vpack.c.bf16 %v1566_v23, %v1565_v58 }
0x1b5c   :  { %2168 = vtanh.f32 %v1546_v41 }
0x1b5d   :  { %v903_v42 = vpop.permute.xlu1 %902  ;;  %2087 = vmatprep.subr.bf16.mxu0 %v2086_v45 }
0x1b5e   :  { %906 = vst.msk [vmem:[#allocation2] sm:$0xc] %vm905_vm4, %v903_v42  ;;  %2089 = vmatpush3.bf16.msra.mxu0 %v2086_v45 }
0x1b61   :  { %v1125_v43 = vpop.permute.xlu1 %1124 }
0x1b62   :  { %1128 = vst.msk [vmem:[#allocation2] sm:$0xc0] %vm1127_vm5, %v1125_v43 }
0x1b65   :  { %v1450_v44 = vpop.permute.xlu1 %1449 }
0x1b66   :  { %v2169_v36 = vpop.eup %2168  ;;  %1452 = vst.msk [vmem:[#allocation2 + $0x8] sm:$0x30] %vm1016_vm6, %v1450_v44 }
0x1b67   :  { %1550 = vrot.lane.b32.xlu0 %v2169_v36, %s2298_s9 }
0x1b6b   :  { %1013 = vrot.lane.b32.xlu0 %v2842_v1, %s2298_s9  ;;  %v1568_v1 = vld [vmem:[%s2971_s11 + $0x18] sm:$0xff] }
0x1b6c   :  { %v2090_v47 = vpack.c.bf16 %v1568_v1, %v1567_v46 }
0x1b6e   :  { %2091 = vmatprep.subr.bf16.mxu0 %v2090_v47 }
0x1b6f   :  { %1339 = vrot.lane.b32.xlu0 %v2890_v4, %s2298_s9  ;;  %2093 = vmatpush3.bf16.msra.mxu0 %v2090_v47 }
0x1bd9   :  { %v1551_v54 = vpop.permute.xlu0 %1550 }
0x1bda   :  { %v1553_v48 = vmul.f32 %v1551_v54, %v1548_v50 }
0x1bdc   :  { %v1557_v56 = vadd.f32 %v1556_v55, %v1553_v48 }
0x1bdd   :  { %v1014_v53 = vpop.permute.xlu0 %1013 }
0x1bde   :  { %1017 = vst.msk [vmem:[#allocation2] sm:$0x30] %vm1016_vm6, %v1014_v53  ;;  %1559 = vrot.lane.b32.xlu0 %v1557_v56, %s2298_s9 }
0x1be1   :  { %v1340_v57 = vpop.permute.xlu0 %1339 }
0x1be2   :  { %1342 = vst.msk [vmem:[#allocation2 + $0x8] sm:$0xc] %vm905_vm4, %v1340_v57 }
0x1be5   :  { %v1563_v49 = vld [vmem:[#allocation2] sm:$0xff] }
0x1be6   :  { %1923 = vmatprep.mubr.msk.f32.mxu0 %vm362_vm0, %v1563_v49 }
0x1c50   :  { %v1560_v52 = vpop.permute.xlu0 %1559 }
0x1c51   :  { %1562 = vst.msk [vmem:[#allocation2 + $0x8] sm:$0xc0] %vm1127_vm5, %v1560_v52 }
0x1c58   :  { %v1564_v59 = vld [vmem:[#allocation2 + $0x8] sm:$0xff] }
0x1c59   :  { %1924 = vmatmul.mubr.msk.f32.vlgmr.msra.gmra.mrb[10].mxu0 %vm362_vm0, %v1564_v59 }
0x1d2c   :  { %v1925_v62 = vpop.f32.mrb[10].mxu0 }
0x1d2d   :  { %v1654_v63 = vadd.f32 %v1925_v62, %v1701_v61  ;;  %v1648_v2 = vpop.f32.mrb[11].mxu0 }
0x1d2e   :  { %v1649_v3 = vadd.f32 %v1701_v61, %v1648_v2 }
0x1d2f   :  { %1658 = vst.msk [vmem:[#allocation11 + $0x8] sm:$0xff] %vm446_vm1, %v1654_v63 }
0x1d30   :  { %1657 = vst.msk [vmem:[#allocation11] sm:$0xff] %vm446_vm1, %v1649_v3 }
0x1d31   :  { %2269 = shalt.err (!%p2266_p8)
}
0x1d32   :  { %s2270_s21 = scalar_lea.hbm %s2973_s13, 256 }
0x1d33   :  { %p2271_p9 = scmp.ne.s32.totalorder %s2973_s13, %s2270_s21  ;;  %p2274_p10 = scmp.lt.u32.totalorder %s2270_s21, %s2973_s13 }
0x1d35   :  { %p2276_p11 = pnand %p2274_p10, %p2271_p9 }
0x1d37   :  { %2279 = shalt.err (!%p2276_p11)
}
0x1d38   :  { %1670 = dma.vmem_to_hbm [thread:$0]  %s1665_s16, 256, %s2973_s13, [#allocation5], %s2290_s6, %s2290_s6, %s2291_s26  }
0x1d39   :  { %2286 = dma.done.wait [#allocation5], 256  }
0x1d3a   :  { %2287 = vsyncadd [#allocation5], 4294967040 }
0x1d3b   :  { %1674 = vsyncpa [#allocation4], 1 }
0x1d3c   :  { %1675 = vsyncpa [#allocation7], 1 }
0x1d3d   :  { %1676 = vsyncpa [#allocation10], 1 }
0x1d3e   :  { %1677 = vsyncpa [#allocation5], 1 }

</bundles_post_ra>
